<compile_context>
chip_gen: v6e
topology: v6e:2x2x1
jax: 0.10.0
libtpu: 0.0.40
codegen_flags: <defaults>
</compile_context>

<pallas_src>
import functools

import jax
import jax.numpy as jnp
from jax import lax
from jax.experimental import pallas as pl
from jax.experimental.pallas import tpu as pltpu

LEAKY_SLOPE = 0.01   # torch.nn.LeakyReLU default
LN_EPS = 1e-5        # torch.nn.LayerNorm default


def _round_up(x: int, m: int) -> int:
    return (x + m - 1) // m * m


# --------------------------------------------------------------------------
# Kernel: fused 4-layer MLP (LeakyReLU after the first 3) + LayerNorm on a
# row tile.  The weight set (V vs E) is chosen by the BlockSpec index_maps.
# --------------------------------------------------------------------------
def _fused_mlp_ln_kernel(wset_ref, x_ref, w1_ref, wr_ref, vec_ref, o_ref, *,
                         compute_dtype):
    """
    wset_ref : (n_tiles,) int32 SMEM   (consumed by index_maps only)
    x_ref    : (tile, in_dim)          activation tile (compute_dtype)
    w1_ref   : (in_dim, hidden)        first weight of the selected MLP
    wr_ref   : (3, hidden, hidden)     stacked w2/w3/w4 of the selected MLP
    vec_ref  : (6, hidden)  f32        stacked b1,b2,b3,b4,gamma,beta
    o_ref    : (tile, hidden)          output tile
    """
    del wset_ref
    cd = compute_dtype

    # Hoist all per-layer vectors in a single load; they live in vregs after.
    vec = vec_ref[...]                                   # (6, H) f32
    b1, b2, b3, b4 = vec[0:1], vec[1:2], vec[2:3], vec[3:4]
    gamma, beta = vec[4:5], vec[5:6]

    def leaky(h):
        # VPU max instead of compare+select (slope in (0,1) makes this exact).
        return jnp.maximum(h, LEAKY_SLOPE * h)

    def dense(h, w, b):
        # MXU matmul in compute_dtype with f32 accumulation; bias add in f32.
        return jnp.dot(h.astype(cd), w, preferred_element_type=jnp.float32) + b

    h = leaky(dense(x_ref[...], w1_ref[...], b1))
    h = leaky(dense(h, wr_ref[0], b2))
    h = leaky(dense(h, wr_ref[1], b3))
    h = dense(h, wr_ref[2], b4)

    # LayerNorm over features (biased variance, elementwise affine — matches
    # torch).  gamma is folded into the rsqrt scale.
    mu = jnp.mean(h, axis=-1, keepdims=True)
    diff = h - mu
    var = jnp.mean(diff * diff, axis=-1, keepdims=True)
    scale = gamma * lax.rsqrt(var + LN_EPS)
    o_ref[...] = (diff * scale + beta).astype(o_ref.dtype)


# --------------------------------------------------------------------------
# Parameter packing (done once, outside the per-call hot path).
# --------------------------------------------------------------------------
def pack_encoder_params(v_params, e_params, compute_dtype=jnp.bfloat16):
    """Stack V/E weight sets into (2, ...) arrays in the MXU compute dtype."""
    compute_dtype = jnp.dtype(compute_dtype)
    hidden = v_params[0][0].shape[1]
    in_dim = max(v_params[0][0].shape[0], e_params[0][0].shape[0])

    def pack_one(params):
        (w1, b1), (w2, b2), (w3, b3), (w4, b4), (gamma, beta) = params
        # Zero-pad the first weight's input rows to the common in_dim; padded
        # x feature columns then contribute exactly zero.
        w1p = jnp.zeros((in_dim, hidden), compute_dtype)
        w1p = w1p.at[: w1.shape[0]].set(w1.astype(compute_dtype))
        wr = jnp.stack([w2, w3, w4]).astype(compute_dtype)          # (3,H,H)
        vec = jnp.stack([b1, b2, b3, b4, gamma, beta]).astype(jnp.float32)
        return w1p, wr, vec

    w1_v, wr_v, vec_v = pack_one(v_params)
    w1_e, wr_e, vec_e = pack_one(e_params)
    return (jnp.stack([w1_v, w1_e]),       # (2, in_dim, hidden)
            jnp.stack([wr_v, wr_e]),       # (2, 3, hidden, hidden)
            jnp.stack([vec_v, vec_e]))     # (2, 6, hidden)  f32


def _param_spec(block_shape, index_map, single_buffer):
    """BlockSpec for a grid-(mostly)-invariant parameter block.

    Single-buffered (pl.Buffered(1)) when supported: the block only changes
    at the V->E boundary, so a second VMEM copy buys nothing.
    """
    if single_buffer:
        try:
            return pl.BlockSpec(block_shape, index_map,
                                pipeline_mode=pl.Buffered(1))
        except (AttributeError, TypeError, ValueError):
            pass
    return pl.BlockSpec(block_shape, index_map)


# --------------------------------------------------------------------------
# Fused forward for both MLPs in one pallas_call.
# --------------------------------------------------------------------------
def encoder_apply(V, E, w1_s, wr_s, vec_s, *, tile_rows=1024, out_dtype=None,
                  single_buffer_params=True):
    """Apply the fused V/E MLP+LayerNorm kernel.  Returns (latent_V, latent_E)."""
    compute_dtype = jnp.dtype(w1_s.dtype)
    out_dtype = jnp.dtype(V.dtype if out_dtype is None else out_dtype)

    rows_v, _ = V.shape
    rows_e, _ = E.shape
    _, in_dim, hidden = w1_s.shape

    cd_bytes = compute_dtype.itemsize
    out_bytes = out_dtype.itemsize
    sub = {4: 8, 2: 16, 1: 32}.get(cd_bytes, 8)   # sublane packing multiple

    # Row tile: as large as possible (amortize ~0.35 us/grid-step) but no
    # larger than the bigger row segment, rounded to the sublane pack.
    tile = min(int(tile_rows), _round_up(max(rows_v, rows_e), sub))
    tile = max(sub, _round_up(tile, sub))

    def prep(x, rows):
        x = x.astype(compute_dtype)
        feat_pad = in_dim - x.shape[1]
        row_pad = _round_up(rows, tile) - rows
        if feat_pad or row_pad:
            # TODO(synk): for very large graphs, fold this pad into the
            # producer / use a masked edge tile instead of an HBM round trip.
            x = jnp.pad(x, ((0, row_pad), (0, feat_pad)))
        return x

    Vp = prep(V, rows_v)
    Ep = prep(E, rows_e)
    nv_tiles = Vp.shape[0] // tile
    ne_tiles = Ep.shape[0] // tile
    n_tiles = nv_tiles + ne_tiles
    x = jnp.concatenate([Vp, Ep], axis=0)            # (total_rows, in_dim)
    total_rows = x.shape[0]

    # Per-row-tile weight-set id (0 = V MLP, 1 = E MLP), prefetched into SMEM.
    wset = jnp.concatenate([jnp.zeros((nv_tiles,), jnp.int32),
                            jnp.ones((ne_tiles,), jnp.int32)])

    # ---- VMEM budget (lane-padded / sublane-packed footprints) -------------
    lanes_in = _round_up(in_dim, 128)
    lanes_h = _round_up(hidden, 128)
    x_tile_b = tile * lanes_in * cd_bytes
    o_tile_b = tile * lanes_h * out_bytes
    param_b = (_round_up(in_dim, sub) * lanes_h * cd_bytes          # w1 block
               + 3 * _round_up(hidden, sub) * lanes_h * cd_bytes    # w2/w3/w4
               + _round_up(6, 8) * lanes_h * 4)                     # vecs f32
    param_copies = 1 if single_buffer_params else 2
    interm_b = 4 * tile * lanes_h * 4                               # f32 temps
    vmem_needed = 2 * (x_tile_b + o_tile_b) + param_copies * param_b + interm_b
    vmem_limit = int(min(max(3 * vmem_needed // 2, 16 << 20), 64 << 20))

    flops = 2 * total_rows * hidden * (in_dim + 3 * hidden)
    bytes_accessed = (total_rows * in_dim * cd_bytes
                      + total_rows * hidden * out_bytes
                      + 2 * (in_dim * hidden + 3 * hidden * hidden) * cd_bytes
                      + 2 * 6 * hidden * 4)
    cost = pl.CostEstimate(flops=flops, transcendentals=total_rows,
                           bytes_accessed=bytes_accessed)

    row_map = lambda i, ws: (i, 0)
    w1_map = lambda i, ws: (ws[i], 0, 0)
    wr_map = lambda i, ws: (ws[i], 0, 0, 0)
    vec_map = lambda i, ws: (ws[i], 0, 0)

    grid_spec = pltpu.PrefetchScalarGridSpec(
        num_scalar_prefetch=1,
        grid=(n_tiles,),
        in_specs=[
            pl.BlockSpec((tile, in_dim), row_map),                       # x
            _param_spec((None, in_dim, hidden), w1_map,
                        single_buffer_params),                           # w1
            _param_spec((None, 3, hidden, hidden), wr_map,
                        single_buffer_params),                           # w2-4
            _param_spec((None, 6, hidden), vec_map,
                        single_buffer_params),                           # vecs
        ],
        out_specs=pl.BlockSpec((tile, hidden), row_map),
    )

    out = pl.pallas_call(
        functools.partial(_fused_mlp_ln_kernel, compute_dtype=compute_dtype),
        out_shape=jax.ShapeDtypeStruct((total_rows, hidden), out_dtype),
        grid_spec=grid_spec,
        compiler_params=pltpu.CompilerParams(
            dimension_semantics=("parallel",),   # row tiles independent; on
            vmem_limit_bytes=vmem_limit,         # v7x they split across TCs
        ),
        cost_estimate=cost,
    )(wset, x, w1_s, wr_s, vec_s)

    latent_V = out[:rows_v]
    latent_E = out[nv_tiles * tile: nv_tiles * tile + rows_e]
    return latent_V, latent_E


# --------------------------------------------------------------------------
# Parameter init (shapes match nn.Linear / nn.LayerNorm), Graph, Encoder.
# --------------------------------------------------------------------------
def init_mlp_params(key, in_dim, hidden):
    keys = jax.random.split(key, 8)
    dims = [(in_dim, hidden), (hidden, hidden), (hidden, hidden), (hidden, hidden)]
    params = []
    for i, (d_in, d_out) in enumerate(dims):
        scale = 1.0 / jnp.sqrt(jnp.float32(d_in))
        w = jax.random.uniform(keys[2 * i], (d_in, d_out), jnp.float32,
                               minval=-scale, maxval=scale)
        b = jax.random.uniform(keys[2 * i + 1], (d_out,), jnp.float32,
                               minval=-scale, maxval=scale)
        params.append((w, b))
    params.append((jnp.ones((hidden,), jnp.float32),
                   jnp.zeros((hidden,), jnp.float32)))
    return tuple(params)


class Graph:
    def __init__(self, V, E, N):
        self.V = V
        self.E = E
        self.N = N


class Encoder:
    """JAX/Pallas equivalent of the PyTorch Encoder module."""

    def __init__(self, V_dim, E_dim, hidden_dim, key, *,
                 tile_rows=1024, matmul_dtype=jnp.bfloat16, out_dtype=None,
                 single_buffer_params=True):
        kv, ke = jax.random.split(key)
        self.v_params = init_mlp_params(kv, V_dim, hidden_dim)
        self.e_params = init_mlp_params(ke, E_dim, hidden_dim)
        self.hidden_dim = hidden_dim
        self._tile_rows = tile_rows
        self._out_dtype = out_dtype
        self._single_buffer = single_buffer_params
        # Pre-pack once (stack V/E weight sets, cast to the MXU compute dtype)
        # so the pallas_call is the only HBM-touching op per forward.
        self._packed = pack_encoder_params(self.v_params, self.e_params,
                                           matmul_dtype)
        self._fwd = self._build_fwd(self._single_buffer)

    def _build_fwd(self, single_buffer):
        return jax.jit(functools.partial(
            encoder_apply, tile_rows=self._tile_rows,
            out_dtype=self._out_dtype, single_buffer_params=single_buffer))

    def __call__(self, graph: Graph) -> Graph:
        w1_s, wr_s, vec_s = self._packed
        try:
            latent_V, latent_E = self._fwd(graph.V, graph.E, w1_s, wr_s, vec_s)
        except Exception:
            if not self._single_buffer:
                raise
            # This JAX version rejected pl.Buffered(1) for the parameter
            # blocks; fall back to default double buffering and retry once.
            self._single_buffer = False
            self._fwd = self._build_fwd(False)
            latent_V, latent_E = self._fwd(graph.V, graph.E, w1_s, wr_s, vec_s)
        return Graph(latent_V, latent_E, graph.N)


# --------------------------------------------------------------------------
# Pure-JAX reference for correctness checks.
# --------------------------------------------------------------------------
def _reference_mlp(x, params):
    (w1, b1), (w2, b2), (w3, b3), (w4, b4), (gamma, beta) = params
    leaky = lambda h: jnp.where(h > 0, h, LEAKY_SLOPE * h)
    h = leaky(x @ w1 + b1)
    h = leaky(h @ w2 + b2)
    h = leaky(h @ w3 + b3)
    h = h @ w4 + b4
    mu = jnp.mean(h, axis=-1, keepdims=True)
    var = jnp.mean((h - mu) ** 2, axis=-1, keepdims=True)
    return (h - mu) / jnp.sqrt(var + LN_EPS) * gamma + beta


if __name__ == "__main__":
    key = jax.random.PRNGKey(0)
    k_param, k_v, k_e = jax.random.split(key, 3)

    # Small but lane-dense hidden dim (multiple of 128); ragged row counts to
    # exercise the padding / tile-boundary path.
    V_dim, E_dim, hidden_dim = 6, 4, 128
    num_nodes, num_edges = 19, 45

    V = jax.random.normal(k_v, (num_nodes, V_dim), jnp.float32)
    E = jax.random.normal(k_e, (num_edges, E_dim), jnp.float32)
    N = jnp.array([num_nodes], jnp.int32)
    graph = Graph(V, E, N)

    # Default path: bf16 MXU matmuls, f32 accumulation + LayerNorm, f32 out.
    encoder = Encoder(V_dim, E_dim, hidden_dim, k_param)
    latent = encoder(graph)
    jax.block_until_ready(latent.V)
    jax.block_until_ready(latent.E)

    ref_V = _reference_mlp(V, encoder.v_params)
    ref_E = _reference_mlp(E, encoder.e_params)
    assert latent.V.shape == (num_nodes, hidden_dim)
    assert latent.E.shape == (num_edges, hidden_dim)
    assert bool(jnp.all(jnp.isfinite(latent.V)))
    assert bool(jnp.all(jnp.isfinite(latent.E)))
    assert float(jnp.max(jnp.abs(latent.V - ref_V))) < 0.25   # bf16 weights/x
    assert float(jnp.max(jnp.abs(latent.E - ref_E))) < 0.25

    # f32 MXU path: tight check against the pure-JAX reference.
    packed_f32 = pack_encoder_params(encoder.v_params, encoder.e_params,
                                     jnp.float32)
    v32, e32 = encoder_apply(V, E, *packed_f32,
                             single_buffer_params=encoder._single_buffer)
    jax.block_until_ready(v32)
    assert jnp.allclose(v32, ref_V, atol=1e-4, rtol=1e-4)
    assert jnp.allclose(e32, ref_E, atol=1e-4, rtol=1e-4)

    # bf16 output path (halves the dominant HBM write stream).
    v_bf16, e_bf16 = encoder_apply(V, E, *encoder._packed,
                                   out_dtype=jnp.bfloat16,
                                   single_buffer_params=encoder._single_buffer)
    jax.block_until_ready(v_bf16)
    assert v_bf16.dtype == jnp.bfloat16 and e_bf16.dtype == jnp.bfloat16
    assert float(jnp.max(jnp.abs(v_bf16.astype(jnp.float32) - ref_V))) < 0.25

    print("KERNEL_OK")
</pallas_src>

<mosaic_0001>
module attributes {stable_mosaic.version = 11 : i64} {
  func.func @_fused_mlp_ln_kernel(%arg0: i32, %arg1: memref<2xi32, #tpu.memory_space<smem>>, %arg2: memref<48x6xbf16, #tpu.memory_space<vmem>>, %arg3: memref<1x6x128xbf16, #tpu.memory_space<vmem>>, %arg4: memref<1x3x128x128xbf16, #tpu.memory_space<vmem>>, %arg5: memref<1x6x128xf32, #tpu.memory_space<vmem>>, %arg6: memref<48x128xf32, #tpu.memory_space<vmem>>) attributes {dimension_semantics = [#tpu.dimension_semantics<parallel>], iteration_bounds = array<i64: 2>, scalar_prefetch = 1 : i64, scratch_operands = 0 : i64, tpu.core_type = #tpu.core_type<tc>, window_params = [{transform_indices = @transform_0, window_bounds = array<i64: 48, 6>}, {pipeline_mode = #tpu.pipeline_mode<synchronous>, transform_indices = @transform_1, window_bounds = array<i64: 1, 6, 128>}, {pipeline_mode = #tpu.pipeline_mode<synchronous>, transform_indices = @transform_2, window_bounds = array<i64: 1, 3, 128, 128>}, {pipeline_mode = #tpu.pipeline_mode<synchronous>, transform_indices = @transform_3, window_bounds = array<i64: 1, 6, 128>}, {transform_indices = @transform_4, window_bounds = array<i64: 48, 128>}]} {
    %c0 = arith.constant 0 : index
    %c0_0 = arith.constant 0 : index
    %c0_1 = arith.constant 0 : index
    %0 = vector.load %arg5[%c0, %c0_0, %c0_1] : memref<1x6x128xf32, #tpu.memory_space<vmem>>, vector<1x6x128xf32>
    %1 = vector.shape_cast %0 : vector<1x6x128xf32> to vector<6x128xf32>
    %2 = vector.extract_strided_slice %1 {offsets = [0, 0], sizes = [1, 128], strides = [1, 1]} : vector<6x128xf32> to vector<1x128xf32>
    %3 = vector.extract_strided_slice %1 {offsets = [1, 0], sizes = [1, 128], strides = [1, 1]} : vector<6x128xf32> to vector<1x128xf32>
    %4 = vector.extract_strided_slice %1 {offsets = [2, 0], sizes = [1, 128], strides = [1, 1]} : vector<6x128xf32> to vector<1x128xf32>
    %5 = vector.extract_strided_slice %1 {offsets = [3, 0], sizes = [1, 128], strides = [1, 1]} : vector<6x128xf32> to vector<1x128xf32>
    %6 = vector.extract_strided_slice %1 {offsets = [4, 0], sizes = [1, 128], strides = [1, 1]} : vector<6x128xf32> to vector<1x128xf32>
    %7 = vector.extract_strided_slice %1 {offsets = [5, 0], sizes = [1, 128], strides = [1, 1]} : vector<6x128xf32> to vector<1x128xf32>
    %c0_2 = arith.constant 0 : index
    %c0_3 = arith.constant 0 : index
    %8 = vector.load %arg2[%c0_2, %c0_3] : memref<48x6xbf16, #tpu.memory_space<vmem>>, vector<48x6xbf16>
    %c0_4 = arith.constant 0 : index
    %c0_5 = arith.constant 0 : index
    %c0_6 = arith.constant 0 : index
    %9 = vector.load %arg3[%c0_4, %c0_5, %c0_6] : memref<1x6x128xbf16, #tpu.memory_space<vmem>>, vector<1x6x128xbf16>
    %10 = vector.shape_cast %9 : vector<1x6x128xbf16> to vector<6x128xbf16>
    %cst = arith.constant dense<0.000000e+00> : vector<48x128xf32>
    %11 = tpu.matmul %8, %10, %cst {dimension_numbers = #tpu.dot_dimension_numbers<[1], [0], [0], [1], [0, 0, 1, 1], [], []>} : vector<48x6xbf16>, vector<6x128xbf16>, vector<48x128xf32> -> vector<48x128xf32>
    %12 = vector.broadcast %2 : vector<1x128xf32> to vector<48x128xf32>
    %13 = arith.addf %11, %12 : vector<48x128xf32>
    %cst_7 = arith.constant 0.00999999977 : f32
    %14 = vector.broadcast %cst_7 : f32 to vector<48x128xf32>
    %15 = arith.mulf %14, %13 : vector<48x128xf32>
    %16 = arith.maximumf %13, %15 : vector<48x128xf32>
    %c0_8 = arith.constant 0 : index
    %c0_9 = arith.constant 0 : index
    %c0_10 = arith.constant 0 : index
    %c0_11 = arith.constant 0 : index
    %17 = vector.load %arg4[%c0_8, %c0_9, %c0_10, %c0_11] : memref<1x3x128x128xbf16, #tpu.memory_space<vmem>>, vector<1x1x128x128xbf16>
    %18 = vector.shape_cast %17 : vector<1x1x128x128xbf16> to vector<128x128xbf16>
    %19 = arith.truncf %16 : vector<48x128xf32> to vector<48x128xbf16>
    %cst_12 = arith.constant dense<0.000000e+00> : vector<48x128xf32>
    %20 = tpu.matmul %19, %18, %cst_12 {dimension_numbers = #tpu.dot_dimension_numbers<[1], [0], [0], [1], [0, 0, 1, 1], [], []>} : vector<48x128xbf16>, vector<128x128xbf16>, vector<48x128xf32> -> vector<48x128xf32>
    %21 = vector.broadcast %3 : vector<1x128xf32> to vector<48x128xf32>
    %22 = arith.addf %20, %21 : vector<48x128xf32>
    %cst_13 = arith.constant 0.00999999977 : f32
    %23 = vector.broadcast %cst_13 : f32 to vector<48x128xf32>
    %24 = arith.mulf %23, %22 : vector<48x128xf32>
    %25 = arith.maximumf %22, %24 : vector<48x128xf32>
    %c0_14 = arith.constant 0 : index
    %c1 = arith.constant 1 : index
    %c0_15 = arith.constant 0 : index
    %c0_16 = arith.constant 0 : index
    %26 = vector.load %arg4[%c0_14, %c1, %c0_15, %c0_16] : memref<1x3x128x128xbf16, #tpu.memory_space<vmem>>, vector<1x1x128x128xbf16>
    %27 = vector.shape_cast %26 : vector<1x1x128x128xbf16> to vector<128x128xbf16>
    %28 = arith.truncf %25 : vector<48x128xf32> to vector<48x128xbf16>
    %cst_17 = arith.constant dense<0.000000e+00> : vector<48x128xf32>
    %29 = tpu.matmul %28, %27, %cst_17 {dimension_numbers = #tpu.dot_dimension_numbers<[1], [0], [0], [1], [0, 0, 1, 1], [], []>} : vector<48x128xbf16>, vector<128x128xbf16>, vector<48x128xf32> -> vector<48x128xf32>
    %30 = vector.broadcast %4 : vector<1x128xf32> to vector<48x128xf32>
    %31 = arith.addf %29, %30 : vector<48x128xf32>
    %cst_18 = arith.constant 0.00999999977 : f32
    %32 = vector.broadcast %cst_18 : f32 to vector<48x128xf32>
    %33 = arith.mulf %32, %31 : vector<48x128xf32>
    %34 = arith.maximumf %31, %33 : vector<48x128xf32>
    %c0_19 = arith.constant 0 : index
    %c2 = arith.constant 2 : index
    %c0_20 = arith.constant 0 : index
    %c0_21 = arith.constant 0 : index
    %35 = vector.load %arg4[%c0_19, %c2, %c0_20, %c0_21] : memref<1x3x128x128xbf16, #tpu.memory_space<vmem>>, vector<1x1x128x128xbf16>
    %36 = vector.shape_cast %35 : vector<1x1x128x128xbf16> to vector<128x128xbf16>
    %37 = arith.truncf %34 : vector<48x128xf32> to vector<48x128xbf16>
    %cst_22 = arith.constant dense<0.000000e+00> : vector<48x128xf32>
    %38 = tpu.matmul %37, %36, %cst_22 {dimension_numbers = #tpu.dot_dimension_numbers<[1], [0], [0], [1], [0, 0, 1, 1], [], []>} : vector<48x128xbf16>, vector<128x128xbf16>, vector<48x128xf32> -> vector<48x128xf32>
    %39 = vector.broadcast %5 : vector<1x128xf32> to vector<48x128xf32>
    %40 = arith.addf %38, %39 : vector<48x128xf32>
    %cst_23 = arith.constant dense<0.000000e+00> : vector<48xf32>
    %41 = vector.multi_reduction <add>, %40, %cst_23 [1] : vector<48x128xf32> to vector<48xf32>
    %42 = vector.shape_cast %41 : vector<48xf32> to vector<48x1xf32>
    %cst_24 = arith.constant 1.280000e+02 : f32
    %43 = vector.broadcast %cst_24 : f32 to vector<48x1xf32>
    %44 = arith.divf %42, %43 : vector<48x1xf32>
    %45 = vector.broadcast %44 : vector<48x1xf32> to vector<48x128xf32>
    %46 = arith.subf %40, %45 : vector<48x128xf32>
    %47 = arith.mulf %46, %46 : vector<48x128xf32>
    %cst_25 = arith.constant dense<0.000000e+00> : vector<48xf32>
    %48 = vector.multi_reduction <add>, %47, %cst_25 [1] : vector<48x128xf32> to vector<48xf32>
    %49 = vector.shape_cast %48 : vector<48xf32> to vector<48x1xf32>
    %cst_26 = arith.constant 1.280000e+02 : f32
    %50 = vector.broadcast %cst_26 : f32 to vector<48x1xf32>
    %51 = arith.divf %49, %50 : vector<48x1xf32>
    %cst_27 = arith.constant 9.99999974E-6 : f32
    %52 = vector.broadcast %cst_27 : f32 to vector<48x1xf32>
    %53 = arith.addf %51, %52 : vector<48x1xf32>
    %54 = math.rsqrt %53 : vector<48x1xf32>
    %55 = vector.broadcast %6 : vector<1x128xf32> to vector<48x128xf32>
    %56 = vector.broadcast %54 : vector<48x1xf32> to vector<48x128xf32>
    %57 = arith.mulf %55, %56 : vector<48x128xf32>
    %58 = arith.mulf %46, %57 : vector<48x128xf32>
    %59 = vector.broadcast %7 : vector<1x128xf32> to vector<48x128xf32>
    %60 = arith.addf %58, %59 : vector<48x128xf32>
    %c0_28 = arith.constant 0 : index
    %c0_29 = arith.constant 0 : index
    %61 = vector.load %arg6[%c0_28, %c0_29] : memref<48x128xf32, #tpu.memory_space<vmem>>, vector<48x128xf32>
    tpu.vector_store %arg6[%c0_28, %c0_29], %60 {strides = array<i32>} : memref<48x128xf32, #tpu.memory_space<vmem>>, vector<48x128xf32>,
    return
  }
  func.func @transform_0(%arg0: i32, %arg1: memref<2xi32, #tpu.memory_space<smem>>) -> (i32, i32) {
    %c0_i32 = arith.constant 0 : i32
    %c0_i32_0 = arith.constant 0 : i32
    return %arg0, %c0_i32 : i32, i32
  }
  func.func @transform_1(%arg0: i32, %arg1: memref<2xi32, #tpu.memory_space<smem>>) -> (i32, i32, i32) {
    %0 = arith.index_cast %arg0 : i32 to index
    %1 = memref.load %arg1[%0] : memref<2xi32, #tpu.memory_space<smem>>
    %c0_i32 = arith.constant 0 : i32
    %c0_i32_0 = arith.constant 0 : i32
    %c0_i32_1 = arith.constant 0 : i32
    return %1, %c0_i32, %c0_i32_0 : i32, i32, i32
  }
  func.func @transform_2(%arg0: i32, %arg1: memref<2xi32, #tpu.memory_space<smem>>) -> (i32, i32, i32, i32) {
    %0 = arith.index_cast %arg0 : i32 to index
    %1 = memref.load %arg1[%0] : memref<2xi32, #tpu.memory_space<smem>>
    %c0_i32 = arith.constant 0 : i32
    %c0_i32_0 = arith.constant 0 : i32
    %c0_i32_1 = arith.constant 0 : i32
    %c0_i32_2 = arith.constant 0 : i32
    return %1, %c0_i32, %c0_i32_0, %c0_i32_1 : i32, i32, i32, i32
  }
  func.func @transform_3(%arg0: i32, %arg1: memref<2xi32, #tpu.memory_space<smem>>) -> (i32, i32, i32) {
    %0 = arith.index_cast %arg0 : i32 to index
    %1 = memref.load %arg1[%0] : memref<2xi32, #tpu.memory_space<smem>>
    %c0_i32 = arith.constant 0 : i32
    %c0_i32_0 = arith.constant 0 : i32
    %c0_i32_1 = arith.constant 0 : i32
    return %1, %c0_i32, %c0_i32_0 : i32, i32, i32
  }
  func.func @transform_4(%arg0: i32, %arg1: memref<2xi32, #tpu.memory_space<smem>>) -> (i32, i32) {
    %c0_i32 = arith.constant 0 : i32
    %c0_i32_0 = arith.constant 0 : i32
    return %arg0, %c0_i32 : i32, i32
  }
}

module attributes {stable_mosaic.version = 11 : i64} {
  func.func @_fused_mlp_ln_kernel(%arg0: i32, %arg1: memref<2xi32, #tpu.memory_space<smem>>, %arg2: memref<48x6xbf16, #tpu.memory_space<vmem>>, %arg3: memref<1x6x128xbf16, #tpu.memory_space<vmem>>, %arg4: memref<1x3x128x128xbf16, #tpu.memory_space<vmem>>, %arg5: memref<1x6x128xf32, #tpu.memory_space<vmem>>, %arg6: memref<48x128xf32, #tpu.memory_space<vmem>>) attributes {dimension_semantics = [#tpu.dimension_semantics<parallel>], iteration_bounds = array<i64: 2>, scalar_prefetch = 1 : i64, scratch_operands = 0 : i64, tpu.core_type = #tpu.core_type<tc>, window_params = [{transform_indices = @transform_0, window_bounds = array<i64: 48, 6>}, {transform_indices = @transform_1, window_bounds = array<i64: 1, 6, 128>}, {transform_indices = @transform_2, window_bounds = array<i64: 1, 3, 128, 128>}, {transform_indices = @transform_3, window_bounds = array<i64: 1, 6, 128>}, {transform_indices = @transform_4, window_bounds = array<i64: 48, 128>}]} {
    %c0 = arith.constant 0 : index
    %c0_0 = arith.constant 0 : index
    %c0_1 = arith.constant 0 : index
    %0 = vector.load %arg5[%c0, %c0_0, %c0_1] : memref<1x6x128xf32, #tpu.memory_space<vmem>>, vector<1x6x128xf32>
    %1 = vector.shape_cast %0 : vector<1x6x128xf32> to vector<6x128xf32>
    %2 = vector.extract_strided_slice %1 {offsets = [0, 0], sizes = [1, 128], strides = [1, 1]} : vector<6x128xf32> to vector<1x128xf32>
    %3 = vector.extract_strided_slice %1 {offsets = [1, 0], sizes = [1, 128], strides = [1, 1]} : vector<6x128xf32> to vector<1x128xf32>
    %4 = vector.extract_strided_slice %1 {offsets = [2, 0], sizes = [1, 128], strides = [1, 1]} : vector<6x128xf32> to vector<1x128xf32>
    %5 = vector.extract_strided_slice %1 {offsets = [3, 0], sizes = [1, 128], strides = [1, 1]} : vector<6x128xf32> to vector<1x128xf32>
    %6 = vector.extract_strided_slice %1 {offsets = [4, 0], sizes = [1, 128], strides = [1, 1]} : vector<6x128xf32> to vector<1x128xf32>
    %7 = vector.extract_strided_slice %1 {offsets = [5, 0], sizes = [1, 128], strides = [1, 1]} : vector<6x128xf32> to vector<1x128xf32>
    %c0_2 = arith.constant 0 : index
    %c0_3 = arith.constant 0 : index
    %8 = vector.load %arg2[%c0_2, %c0_3] : memref<48x6xbf16, #tpu.memory_space<vmem>>, vector<48x6xbf16>
    %c0_4 = arith.constant 0 : index
    %c0_5 = arith.constant 0 : index
    %c0_6 = arith.constant 0 : index
    %9 = vector.load %arg3[%c0_4, %c0_5, %c0_6] : memref<1x6x128xbf16, #tpu.memory_space<vmem>>, vector<1x6x128xbf16>
    %10 = vector.shape_cast %9 : vector<1x6x128xbf16> to vector<6x128xbf16>
    %cst = arith.constant dense<0.000000e+00> : vector<48x128xf32>
    %11 = tpu.matmul %8, %10, %cst {dimension_numbers = #tpu.dot_dimension_numbers<[1], [0], [0], [1], [0, 0, 1, 1], [], []>} : vector<48x6xbf16>, vector<6x128xbf16>, vector<48x128xf32> -> vector<48x128xf32>
    %12 = vector.broadcast %2 : vector<1x128xf32> to vector<48x128xf32>
    %13 = arith.addf %11, %12 : vector<48x128xf32>
    %cst_7 = arith.constant 0.00999999977 : f32
    %14 = vector.broadcast %cst_7 : f32 to vector<48x128xf32>
    %15 = arith.mulf %14, %13 : vector<48x128xf32>
    %16 = arith.maximumf %13, %15 : vector<48x128xf32>
    %c0_8 = arith.constant 0 : index
    %c0_9 = arith.constant 0 : index
    %c0_10 = arith.constant 0 : index
    %c0_11 = arith.constant 0 : index
    %17 = vector.load %arg4[%c0_8, %c0_9, %c0_10, %c0_11] : memref<1x3x128x128xbf16, #tpu.memory_space<vmem>>, vector<1x1x128x128xbf16>
    %18 = vector.shape_cast %17 : vector<1x1x128x128xbf16> to vector<128x128xbf16>
    %19 = arith.truncf %16 : vector<48x128xf32> to vector<48x128xbf16>
    %cst_12 = arith.constant dense<0.000000e+00> : vector<48x128xf32>
    %20 = tpu.matmul %19, %18, %cst_12 {dimension_numbers = #tpu.dot_dimension_numbers<[1], [0], [0], [1], [0, 0, 1, 1], [], []>} : vector<48x128xbf16>, vector<128x128xbf16>, vector<48x128xf32> -> vector<48x128xf32>
    %21 = vector.broadcast %3 : vector<1x128xf32> to vector<48x128xf32>
    %22 = arith.addf %20, %21 : vector<48x128xf32>
    %cst_13 = arith.constant 0.00999999977 : f32
    %23 = vector.broadcast %cst_13 : f32 to vector<48x128xf32>
    %24 = arith.mulf %23, %22 : vector<48x128xf32>
    %25 = arith.maximumf %22, %24 : vector<48x128xf32>
    %c0_14 = arith.constant 0 : index
    %c1 = arith.constant 1 : index
    %c0_15 = arith.constant 0 : index
    %c0_16 = arith.constant 0 : index
    %26 = vector.load %arg4[%c0_14, %c1, %c0_15, %c0_16] : memref<1x3x128x128xbf16, #tpu.memory_space<vmem>>, vector<1x1x128x128xbf16>
    %27 = vector.shape_cast %26 : vector<1x1x128x128xbf16> to vector<128x128xbf16>
    %28 = arith.truncf %25 : vector<48x128xf32> to vector<48x128xbf16>
    %cst_17 = arith.constant dense<0.000000e+00> : vector<48x128xf32>
    %29 = tpu.matmul %28, %27, %cst_17 {dimension_numbers = #tpu.dot_dimension_numbers<[1], [0], [0], [1], [0, 0, 1, 1], [], []>} : vector<48x128xbf16>, vector<128x128xbf16>, vector<48x128xf32> -> vector<48x128xf32>
    %30 = vector.broadcast %4 : vector<1x128xf32> to vector<48x128xf32>
    %31 = arith.addf %29, %30 : vector<48x128xf32>
    %cst_18 = arith.constant 0.00999999977 : f32
    %32 = vector.broadcast %cst_18 : f32 to vector<48x128xf32>
    %33 = arith.mulf %32, %31 : vector<48x128xf32>
    %34 = arith.maximumf %31, %33 : vector<48x128xf32>
    %c0_19 = arith.constant 0 : index
    %c2 = arith.constant 2 : index
    %c0_20 = arith.constant 0 : index
    %c0_21 = arith.constant 0 : index
    %35 = vector.load %arg4[%c0_19, %c2, %c0_20, %c0_21] : memref<1x3x128x128xbf16, #tpu.memory_space<vmem>>, vector<1x1x128x128xbf16>
    %36 = vector.shape_cast %35 : vector<1x1x128x128xbf16> to vector<128x128xbf16>
    %37 = arith.truncf %34 : vector<48x128xf32> to vector<48x128xbf16>
    %cst_22 = arith.constant dense<0.000000e+00> : vector<48x128xf32>
    %38 = tpu.matmul %37, %36, %cst_22 {dimension_numbers = #tpu.dot_dimension_numbers<[1], [0], [0], [1], [0, 0, 1, 1], [], []>} : vector<48x128xbf16>, vector<128x128xbf16>, vector<48x128xf32> -> vector<48x128xf32>
    %39 = vector.broadcast %5 : vector<1x128xf32> to vector<48x128xf32>
    %40 = arith.addf %38, %39 : vector<48x128xf32>
    %cst_23 = arith.constant dense<0.000000e+00> : vector<48xf32>
    %41 = vector.multi_reduction <add>, %40, %cst_23 [1] : vector<48x128xf32> to vector<48xf32>
    %42 = vector.shape_cast %41 : vector<48xf32> to vector<48x1xf32>
    %cst_24 = arith.constant 1.280000e+02 : f32
    %43 = vector.broadcast %cst_24 : f32 to vector<48x1xf32>
    %44 = arith.divf %42, %43 : vector<48x1xf32>
    %45 = vector.broadcast %44 : vector<48x1xf32> to vector<48x128xf32>
    %46 = arith.subf %40, %45 : vector<48x128xf32>
    %47 = arith.mulf %46, %46 : vector<48x128xf32>
    %cst_25 = arith.constant dense<0.000000e+00> : vector<48xf32>
    %48 = vector.multi_reduction <add>, %47, %cst_25 [1] : vector<48x128xf32> to vector<48xf32>
    %49 = vector.shape_cast %48 : vector<48xf32> to vector<48x1xf32>
    %cst_26 = arith.constant 1.280000e+02 : f32
    %50 = vector.broadcast %cst_26 : f32 to vector<48x1xf32>
    %51 = arith.divf %49, %50 : vector<48x1xf32>
    %cst_27 = arith.constant 9.99999974E-6 : f32
    %52 = vector.broadcast %cst_27 : f32 to vector<48x1xf32>
    %53 = arith.addf %51, %52 : vector<48x1xf32>
    %54 = math.rsqrt %53 : vector<48x1xf32>
    %55 = vector.broadcast %6 : vector<1x128xf32> to vector<48x128xf32>
    %56 = vector.broadcast %54 : vector<48x1xf32> to vector<48x128xf32>
    %57 = arith.mulf %55, %56 : vector<48x128xf32>
    %58 = arith.mulf %46, %57 : vector<48x128xf32>
    %59 = vector.broadcast %7 : vector<1x128xf32> to vector<48x128xf32>
    %60 = arith.addf %58, %59 : vector<48x128xf32>
    %c0_28 = arith.constant 0 : index
    %c0_29 = arith.constant 0 : index
    %61 = vector.load %arg6[%c0_28, %c0_29] : memref<48x128xf32, #tpu.memory_space<vmem>>, vector<48x128xf32>
    tpu.vector_store %arg6[%c0_28, %c0_29], %60 {strides = array<i32>} : memref<48x128xf32, #tpu.memory_space<vmem>>, vector<48x128xf32>,
    return
  }
  func.func @transform_0(%arg0: i32, %arg1: memref<2xi32, #tpu.memory_space<smem>>) -> (i32, i32) {
    %c0_i32 = arith.constant 0 : i32
    %c0_i32_0 = arith.constant 0 : i32
    return %arg0, %c0_i32 : i32, i32
  }
  func.func @transform_1(%arg0: i32, %arg1: memref<2xi32, #tpu.memory_space<smem>>) -> (i32, i32, i32) {
    %0 = arith.index_cast %arg0 : i32 to index
    %1 = memref.load %arg1[%0] : memref<2xi32, #tpu.memory_space<smem>>
    %c0_i32 = arith.constant 0 : i32
    %c0_i32_0 = arith.constant 0 : i32
    %c0_i32_1 = arith.constant 0 : i32
    return %1, %c0_i32, %c0_i32_0 : i32, i32, i32
  }
  func.func @transform_2(%arg0: i32, %arg1: memref<2xi32, #tpu.memory_space<smem>>) -> (i32, i32, i32, i32) {
    %0 = arith.index_cast %arg0 : i32 to index
    %1 = memref.load %arg1[%0] : memref<2xi32, #tpu.memory_space<smem>>
    %c0_i32 = arith.constant 0 : i32
    %c0_i32_0 = arith.constant 0 : i32
    %c0_i32_1 = arith.constant 0 : i32
    %c0_i32_2 = arith.constant 0 : i32
    return %1, %c0_i32, %c0_i32_0, %c0_i32_1 : i32, i32, i32, i32
  }
  func.func @transform_3(%arg0: i32, %arg1: memref<2xi32, #tpu.memory_space<smem>>) -> (i32, i32, i32) {
    %0 = arith.index_cast %arg0 : i32 to index
    %1 = memref.load %arg1[%0] : memref<2xi32, #tpu.memory_space<smem>>
    %c0_i32 = arith.constant 0 : i32
    %c0_i32_0 = arith.constant 0 : i32
    %c0_i32_1 = arith.constant 0 : i32
    return %1, %c0_i32, %c0_i32_0 : i32, i32, i32
  }
  func.func @transform_4(%arg0: i32, %arg1: memref<2xi32, #tpu.memory_space<smem>>) -> (i32, i32) {
    %c0_i32 = arith.constant 0 : i32
    %c0_i32_0 = arith.constant 0 : i32
    return %arg0, %c0_i32 : i32, i32
  }
}

</mosaic_0001>

<bundles_post_ra>
// kernel: encoder_apply.1
= control target key start
LH: loop header
LB: loop body
LE: loop exit
PB: predicated region body
PF: predicated region fallthrough
CT: control target
= control target key end

     0   :  { %s1581_s0 = inlined_call_operand.vmem [shape: s32[2], index: 0, kind: input, shape index: {}]   ;;  %s1582_s1 = inlined_call_operand.vmem [shape: bf16[96,6], index: 1, kind: input, shape index: {}]   ;;  %s1583_s2 = inlined_call_operand.vmem [shape: bf16[2,6,128], index: 2, kind: input, shape index: {}]   ;;  %s1584_s3 = inlined_call_operand.hbm [shape: bf16[2,3,128,128], index: 3, kind: input, shape index: {}]   ;;  %s1585_s4 = inlined_call_operand.vmem [shape: f32[2,6,128], index: 4, kind: input, shape index: {}]   ;;  %s1586_s5 = inlined_call_operand.vmem [shape: f32[96,128], index: 5, kind: output, shape index: {}]  }
   0x1   :  { %s10_s20 = sshll.u32 %s1581_s0, 4  ;;  %s11_s20 = int_to_ptr.vmem [resolvable:$true] %s10_s20 }
   0x2   :  { %s1280_s21 = scalar_lea.vmem %s11_s20, 16  ;;  %p1285_p1 = scmp.lt.s32.totalorder %s11_s20, %s11_s20 }
   0x3   :  { %p1281_p0 = scmp.ne.s32.totalorder %s11_s20, %s1280_s21  ;;  %p1286_p2 = scmp.lt.s32.totalorder %s1280_s21, %s1280_s21 }
   0x5   :  { %p1287_p3 = por %p1286_p2, %p1285_p1 }
   0x7   :  { %p1288_p4 = pnand %p1287_p3, %p1281_p0 }
   0x9   :  { %1291 = shalt.err (!%p1288_p4)  }
   0xa   :  { %s1358_s22 = smov [#allocation3]  }
   0xb   :  { %13 = dma.vmem_to_smem %s11_s20, 16, %s1358_s22, [#allocation2] }
   0xc   :  { %1336 = dma.done.wait [#allocation2], 16 }
   0xd   :  { %1337 = vsyncadd [#allocation2], 4294967280 }
   0xe   :  { %15 = sfence }
   0xf   :  { %16 = vsyncpa [#allocation5], 0  ;;  %s1397_s23 = smov 0   ;;  %s1399_s24 = smov 0  }
  0x10   :  { %s1401_s25 = smov 0   ;;  %s1403_s0 = smov 0  }
  0x11 LB: > { %s1413_s26 = sadd.s32 4294967295, %s1356_s0   ;;  %s1415_s27 = sadd.s32 1, %s1356_s0   ;;  %s1356_s0 = sphi %s1403_s0, %s1598_s0   ;;  %s1352_s25 = sphi %s1401_s25, %s1597_s25   ;;  %s1348_s24 = sphi %s1399_s24, %s1596_s24   ;;  %s1344_s23 = sphi %s1397_s23, %s1595_s23  }
  0x12   : > { %s80_s28 = sld [smem:[#allocation3 + %s1356_s0]]  ;;  %p98_p5 = scmp.ne.s32.totalorder %s1348_s24, %s1344_s23 }
  0x13   : > { %s81_s29 = sld [smem:[#allocation3 + %s1415_s27]]  ;;  %p99_p6 = scmp.eq.s32.totalorder %s1413_s26, 0 }
  0x14   : > { %p999_p7 = scmp.ge.s32.totalorder %s1356_s0, 1  ;;  %p163_p8 = scmp.lt.s32.totalorder %s1356_s0, 3 }
  0x15   : > { %p1420_p9 = por %p99_p6, %p98_p5  ;;  %s85_s9 = sadd.s32 1, %s1352_s25 }
  0x16   : > { %p1424_p10 = pnand %p999_p7, %p163_p8  ;;  %s1359_s14 = smov [#allocation4]  }
  0x17   : > { %s1590_s30 = scalar_select %p1420_p9, 1, 0 }
  0x18   : > { %s1591_s6 = scalar_select %p1424_p10, 1, 0 }
  0x19   : > { %s1191_s7 = scalar_select %p1420_p9, [#allocation3], [#allocation6] }
  0x1a   : > { %s82_s8 = ssub.s32 %s80_s28, %s81_s29  ;;  %p1195_p12 = pneg %p1424_p10 }
  0x1b   : > { %p83_p11 = scmp.eq.s32.totalorder %s82_s8, 0  ;;  %s1600_s7 = smov (%p1424_p10, %s1191_s7), [#allocation7] }
  0x1c   : > { %s1192_s10 = scalar_select %p1420_p9, %s1413_s26, 0 }
  0x1d   : > { %s1437_s11 = scalar_select %p83_p11, %s1352_s25, %s85_s9  }
  0x1e   : > { %s1602_s10 = smov (%p1424_p10, %s1192_s10), 0  ;;  %p1445_p13 = pnand %p1195_p12, %p1420_p9 }
  0x1f   : > { %s181_s13 = sld [smem:[%s1600_s7 + %s1602_s10]]  ;;  %s188_s15 = sshll.u32 %s1359_s14, 4  ;;  %s189_s15 = int_to_ptr.vmem [resolvable:$true] %s188_s15 }
  0x20   : > { %p1294_p1 = pneg %p1445_p13  ;;  %s1297_s23 = scalar_lea.hbm %s1584_s3, 6144 }
  0x25   : > { %s1190_s16 = smul.u32 3072, %s181_s13 }
  0x27   : > { %s187_s19 = scalar_lea.hbm %s1584_s3, %s1190_s16 }
  0x28   : > { %s1292_s20 = scalar_lea.hbm %s187_s19, 3072  ;;  %p1298_p4 = scmp.lt.s32.totalorder %s187_s19, %s1584_s3 }
  0x29   : > { %p1293_p0 = scmp.ne.s32.totalorder %s187_s19, %s1292_s20  ;;  %p1299_p5 = scmp.lt.s32.totalorder %s1297_s23, %s1292_s20 }
  0x2b   : > { %p1295_p2 = pnand %p1294_p1, %p1293_p0  ;;  %p1300_p6 = por %p1299_p5, %p1298_p4 }
  0x2d   : > { %p1296_p3 = pneg %p1295_p2 }
  0x2f   : > { %p1301_p7 = pnand %p1300_p6, %p1296_p3 }
  0x31   : > { %1304 = shalt.err (!%p1301_p7)
}
  0x32   : > { %s1305_s29 = scalar_lea.vmem %s189_s15, 3072  ;;  %p1313_p9 = scmp.lt.s32.totalorder %s189_s15, %s189_s15 }
  0x33   : > { %p1306_p8 = scmp.ne.s32.totalorder %s189_s15, %s1305_s29  ;;  %p1314_p10 = scmp.lt.s32.totalorder %s1305_s29, %s1305_s29 }
  0x35   : > { %p1308_p11 = pnand %p1306_p8, %p1294_p1  ;;  %p1315_p0 = por %p1314_p10, %p1313_p9 }
  0x37   : > { %p1309_p12 = pneg %p1308_p11 }
  0x39   : > { %p1316_p2 = pnand %p1315_p0, %p1309_p12 }
  0x3b   : > { %1319 = shalt.err (!%p1316_p2)
}
  0x3c   : > { %s1360_s7 = smov 64   ;;  %s1361_s8 = smov 4  }
  0x3d   : > { %1200 = dma.hbm_to_vmem [thread:$0]  (!%p1445_p13), %s187_s19, 3072, %s189_s15, [#allocation5], %s1360_s7, %s1360_s7, %s1361_s8  }
  0x3e   : > { %p1593_p4 = scmp.ne.s32.totalorder %s1591_s6, 0 }
  0x3f   : > { %p1594_p3 = scmp.ne.s32.totalorder (!%p1593_p4), %s1590_s30, 0 }
  0x40   : > { %222 = sbr.rel (%p1593_p4) target bundleno = 1223 (0x4c7), region = 36 }
  0x45   : > { %1339 = dma.done.wait (%p1594_p3), [#allocation5], 3072  }
  0x46   : > { %1341 = vsyncadd (%p1594_p3), [#allocation5], 4294964224  ;;  %s258_s9 = smul.u32 6, %s1413_s26  ;;  %v1362_v0 = vmov 0.0   ;;  %s264_s10 = sld [smem:[#allocation3 + %s1413_s26]]  ;;  %vm1363_vm0 = vmmov 0   ;;  %v292_v19 = vlaneseq }
  0x47   : > { %1076 = vmatprep.subr.bf16.mxu0 %v1362_v0  ;;  %1078 = vmatprep.mubr.msk.bf16.mxu0 %vm1363_vm0, %v1362_v0  ;;  %v1244_v1 = vld [vmem:[#allocation4 + $0x38] sm:$0xff]   ;;  %vm321_vm1 = vcmask 1042432   ;;  %v1245_v2 = vld [vmem:[#allocation4 + $0x30] sm:$0xff]   ;;  %v1246_v3 = vld [vmem:[#allocation4 + $0x28] sm:$0xff]   ;;  %vm311_vm2 = vcmask 48128   ;;  %s271_s18 = sld [smem:[#allocation3 + %s1413_s26]] }
  0x48   : > { %p259_p9 = scmp.lt.s32.totalorder %s258_s9, 11  ;;  %1090 = vmatprep.subr.bf16.mxu1 %v1362_v0  ;;  %1106 = vmatprep.mubr.msk.bf16.mxu1 %vm1363_vm0, %v1362_v0  ;;  %v1247_v7 = vld [vmem:[#allocation4 + $0x20] sm:$0xff]   ;;  %v1248_v8 = vld [vmem:[#allocation4 + $0x18] sm:$0xff]   ;;  %v1249_v11 = vld [vmem:[#allocation4 + $0x10] sm:$0xff]   ;;  %v1514_v20 = vshrl.u32 %v292_v19, 7 }
  0x49   : > { %1091 = vmatpush3.bf16.msra.mxu1 %v1244_v1  ;;  %v1250_v12 = vld [vmem:[#allocation4 + $0x8] sm:$0xff]   ;;  %v1251_v13 = vld [vmem:[#allocation4] sm:$0xff]   ;;  %v1252_v14 = vld [vmem:[#allocation4 + $0x78] sm:$0xff]  }
  0x4a   : > { %s1604_s9 = smov (!%p259_p9, %s258_s9), 11  ;;  %1092 = vmatprep.subr.bf16.mxu1 %v1362_v0  ;;  %v1253_v15 = vld [vmem:[#allocation4 + $0x70] sm:$0xff]   ;;  %v1254_v16 = vld [vmem:[#allocation4 + $0x68] sm:$0xff]   ;;  %v1255_v17 = vld [vmem:[#allocation4 + $0x60] sm:$0xff]   ;;  %v294_v21 = vsub.s32 0, %v1514_v20 }
  0x4b   : > { %s1003_s30 = sshll.u32 %s1604_s9, 2  ;;  %v1256_v18 = vld [vmem:[#allocation4 + $0x58] sm:$0xff]   ;;  %v1257_v57 = vld [vmem:[#allocation4 + $0x50] sm:$0xff]   ;;  %v1258_v58 = vld [vmem:[#allocation4 + $0x48] sm:$0xff]   ;;  %s1006_s26 = sshll.u32 %s1604_s9, 3 }
  0x4c   : > { %p265_p10 = scmp.lt.s32.totalorder %s264_s10, 1  ;;  %s1482_s13 = scalar_lea.vmem %s1582_s1, %s1003_s30  ;;  %v1259_v59 = vld [vmem:[#allocation4 + $0x40] sm:$0xff]   ;;  %v1260_v60 = vld [vmem:[#allocation4 + $0xb8] sm:$0xff]   ;;  %v1261_v61 = vld [vmem:[#allocation4 + $0xb0] sm:$0xff]  }
  0x4d   : > { %1093 = vmatpush3.bf16.msra.mxu1 %v1245_v2  ;;  %v1241_v6 = vld [vmem:[%s1482_s13] sm:$0xff]   ;;  %v1242_v9 = vld [vmem:[%s1482_s13 + $0x8] sm:$0xff]   ;;  %v1243_v10 = vld [vmem:[%s1482_s13 + $0x10] sm:$0xff]   ;;  %p272_p13 = scmp.lt.s32.totalorder %s271_s18, 1  ;;  %v415_v2 = vsub.s32 1, %v1514_v20  ;;  %s281_s28 = scalar_lea.vmem %s1586_s5, %s1006_s26 }
  0x4e   : > { %s1606_s10 = smov (!%p265_p10, %s264_s10), 1  ;;  %1094 = vmatprep.subr.bf16.mxu1 %v1362_v0  ;;  %v1262_v62 = vld [vmem:[#allocation4 + $0xa8] sm:$0xff]   ;;  %v1263_v63 = vld [vmem:[#allocation4 + $0xa0] sm:$0xff]   ;;  %v1264_v1 = vld [vmem:[#allocation4 + $0x98] sm:$0xff]  }
  0x4f   : > { %s1004_s14 = sshll.u32 %s1606_s10, 2  ;;  %s1608_s18 = smov (!%p272_p13, %s271_s18), 1 }
  0x50   : > { %s268_s17 = scalar_lea.vmem %s1583_s2, %s1004_s14  ;;  %s1005_s19 = sshll.u32 %s1608_s18, 3 }
  0x51   : > { %v291_v4 = vld [vmem:[%s268_s17] sm:$0x7]  ;;  %1095 = vmatpush3.bf16.msra.mxu1 %v1246_v3  ;;  %s275_s22 = scalar_lea.vmem %s1585_s4, %s1005_s19 }
  0x52   : > { %v323_v5 = vsel %vm321_vm1, %v291_v4, 0  ;;  %1096 = vmatprep.subr.bf16.mxu1 %v1362_v0  ;;  %v1520_v22 = vld [vmem:[%s275_s22] sm:$0x3f] }
  0x53   : > { %1077 = vmatpush3.bf16.msra.mxu0 %v323_v5  ;;  %v295_v23 = vrot.slane %v1520_v22, %v294_v21  ;;  %v416_v3 = vrot.slane %v1520_v22, %v415_v2 }
  0x54   : > { %1118 = vmatprep.subr.bf16.mxu0 %v1362_v0 }
  0x55   : > { %1097 = vmatpush3.bf16.msra.mxu1 %v1247_v7 }
  0x56   : > { %1079 = vmatmul.mubr.msk.bf16.vlgmr.msra.gmra.mxu0 %vm311_vm2, %v1241_v6  ;;  %1098 = vmatprep.subr.bf16.mxu1 %v1362_v0 }
  0x57   : > { %1082 = vmatprep.mubr.msk.bf16.mxu0 %vm1363_vm0, %v1362_v0  ;;  %1119 = vmatpush3.bf16.msra.mxu0 %v1252_v14 }
  0x58   : > { %1120 = vmatprep.subr.bf16.mxu0 %v1362_v0 }
  0x59   : > { %1099 = vmatpush3.bf16.msra.mxu1 %v1248_v8 }
  0x5a   : > { %1100 = vmatprep.subr.bf16.mxu1 %v1362_v0 }
  0x5b   : > { %1121 = vmatpush3.bf16.msra.mxu0 %v1253_v15 }
  0x5c   : > { %1122 = vmatprep.subr.bf16.mxu0 %v1362_v0 }
  0x5d   : > { %1101 = vmatpush3.bf16.msra.mxu1 %v1249_v11 }
  0x5e   : > { %1083 = vmatmul.mubr.msk.bf16.gmra.mxu0 %vm311_vm2, %v1242_v9  ;;  %1102 = vmatprep.subr.bf16.mxu1 %v1362_v0 }
  0x5f   : > { %1086 = vmatprep.mubr.msk.bf16.mxu0 %vm1363_vm0, %v1362_v0  ;;  %1123 = vmatpush3.bf16.msra.mxu0 %v1254_v16 }
  0x60   : > { %1124 = vmatprep.subr.bf16.mxu0 %v1362_v0 }
  0x61   : > { %1103 = vmatpush3.bf16.msra.mxu1 %v1250_v12 }
  0x62   : > { %1104 = vmatprep.subr.bf16.mxu1 %v1362_v0 }
  0x63   : > { %1125 = vmatpush3.bf16.msra.mxu0 %v1255_v17 }
  0x64   : > { %1126 = vmatprep.subr.bf16.mxu0 %v1362_v0 }
  0x65   : > { %1105 = vmatpush3.bf16.msra.mxu1 %v1251_v13 }
  0x66   : > { %1087 = vmatmul.mubr.msk.bf16.gmra.mxu0 %vm311_vm2, %v1243_v10  ;;  %1174 = vmatprep.subr.bf16.mxu1 %v1362_v0 }
  0x67   : > { %1134 = vmatprep.mubr.msk.bf16.mxu0 %vm1363_vm0, %v1362_v0  ;;  %1127 = vmatpush3.bf16.msra.mxu0 %v1256_v18 }
  0x68   : > { %1128 = vmatprep.subr.bf16.mxu0 %v1362_v0 }
  0x6b   : > { %1129 = vmatpush3.bf16.msra.mxu0 %v1257_v57 }
  0x6c   : > { %1130 = vmatprep.subr.bf16.mxu0 %v1362_v0 }
  0x6f   : > { %1131 = vmatpush3.bf16.msra.mxu0 %v1258_v58 }
  0x70   : > { %1132 = vmatprep.subr.bf16.mxu0 %v1362_v0 }
  0x73   : > { %1133 = vmatpush3.bf16.msra.mxu0 %v1259_v59 }
  0x74   : > { %1146 = vmatprep.subr.bf16.mxu0 %v1362_v0 }
 0x116   : > { %v359_v24 = vpop.f32.mrf.mxu0 }
 0x117   : > { %v360_v25 = vadd.f32 %v359_v24, %v295_v23 }
 0x118   : > { %v1080_v26 = vpop.f32.mrf.mxu0 }
 0x119   : > { %v382_v28 = vmul.f32 0.01, %v360_v25 }
 0x11a   : > { %v362_v27 = vpop.f32.mrf.mxu0 }
 0x11b   : > { %v363_v29 = vadd.f32 %v362_v27, %v295_v23  ;;  %v388_v33 = vmax.f32 %v360_v25, %v382_v28 }
 0x11c   : > { %v1081_v30 = vpop.f32.mrf.mxu0 }
 0x11d   : > { %v383_v31 = vmul.f32 0.01, %v363_v29 }
 0x11e   : > { %v367_v32 = vpop.f32.mrf.mxu0 }
 0x11f   : > { %v389_v34 = vmax.f32 %v363_v29, %v383_v31  ;;  %v368_v35 = vadd.f32 %v367_v32, %v295_v23 }
 0x120   : > { %v1084_v36 = vpop.f32.mrf.mxu0 }
 0x121   : > { %v410_v37 = vpack.c.bf16 %v389_v34, %v388_v33  ;;  %v384_v39 = vmul.f32 0.01, %v368_v35 }
 0x122   : > { %v370_v38 = vpop.f32.mrf.mxu0 }
 0x123   : > { %v371_v40 = vadd.f32 %v370_v38, %v295_v23  ;;  %1107 = vmatmul.mubr.bf16.vlgmr.msra.gmra.mxu1 %v410_v37  ;;  %v390_v44 = vmax.f32 %v368_v35, %v384_v39  ;;  %v1265_v39 = vld [vmem:[#allocation4 + $0x90] sm:$0xff]  }
 0x124   : > { %v1085_v41 = vpop.f32.mrf.mxu0  ;;  %1110 = vmatprep.mubr.msk.bf16.mxu1 %vm1363_vm0, %v1362_v0  ;;  %1182 = vmatpush3.bf16.msra.mxu1 %v1260_v60 }
 0x125   : > { %v385_v42 = vmul.f32 0.01, %v371_v40  ;;  %1175 = vmatprep.subr.bf16.mxu1 %v1362_v0  ;;  %v1267_v41 = vld [vmem:[#allocation4 + $0x80] sm:$0xff]  }
 0x126   : > { %v375_v43 = vpop.f32.mrf.mxu0 }
 0x127   : > { %v391_v45 = vmax.f32 %v371_v40, %v385_v42  ;;  %v376_v46 = vadd.f32 %v375_v43, %v295_v23  ;;  %v1266_v40 = vld [vmem:[#allocation4 + $0x88] sm:$0xff]   ;;  %v556_v42 = vsub.s32 2, %v1514_v20 }
 0x128   : > { %v1088_v47 = vpop.f32.mrf.mxu0  ;;  %1183 = vmatpush3.bf16.msra.mxu1 %v1261_v61 }
 0x129   : > { %v411_v48 = vpack.c.bf16 %v391_v45, %v390_v44  ;;  %v386_v50 = vmul.f32 0.01, %v376_v46  ;;  %1176 = vmatprep.subr.bf16.mxu1 %v1362_v0  ;;  %v557_v43 = vrot.slane %v1520_v22, %v556_v42 }
 0x12a   : > { %v378_v49 = vpop.f32.mrf.mxu0 }
 0x12b   : > { %v379_v51 = vadd.f32 %v378_v49, %v295_v23  ;;  %1111 = vmatmul.mubr.bf16.gmra.mxu1 %v411_v48  ;;  %v392_v54 = vmax.f32 %v376_v46, %v386_v50 }
 0x12c   : > { %v1089_v52 = vpop.f32.mrf.mxu0  ;;  %1114 = vmatprep.mubr.msk.bf16.mxu1 %vm1363_vm0, %v1362_v0  ;;  %1184 = vmatpush3.bf16.msra.mxu1 %v1262_v62 }
 0x12d   : > { %v387_v53 = vmul.f32 0.01, %v379_v51  ;;  %1177 = vmatprep.subr.bf16.mxu1 %v1362_v0 }
 0x12f   : > { %v393_v55 = vmax.f32 %v379_v51, %v387_v53 }
 0x130   : > { %1185 = vmatpush3.bf16.msra.mxu1 %v1263_v63 }
 0x131   : > { %v412_v56 = vpack.c.bf16 %v393_v55, %v392_v54  ;;  %1178 = vmatprep.subr.bf16.mxu1 %v1362_v0 }
 0x133   : > { %1115 = vmatmul.mubr.bf16.gmra.mxu1 %v412_v56 }
 0x134   : > { %1166 = vmatprep.mubr.msk.bf16.mxu1 %vm1363_vm0, %v1362_v0  ;;  %1186 = vmatpush3.bf16.msra.mxu1 %v1264_v1 }
 0x135   : > { %1179 = vmatprep.subr.bf16.mxu1 %v1362_v0 }
 0x138   : > { %1187 = vmatpush3.bf16.msra.mxu1 %v1265_v39 }
 0x139   : > { %1180 = vmatprep.subr.bf16.mxu1 %v1362_v0 }
 0x13c   : > { %1188 = vmatpush3.bf16.msra.mxu1 %v1266_v40 }
 0x13d   : > { %1181 = vmatprep.subr.bf16.mxu1 %v1362_v0 }
 0x140   : > { %1189 = vmatpush3.bf16.msra.mxu1 %v1267_v41 }
 0x1e3   : > { %v499_v4 = vpop.f32.mrf.mxu1 }
 0x1e4   : > { %v500_v5 = vadd.f32 %v499_v4, %v416_v3 }
 0x1e5   : > { %v1108_v6 = vpop.f32.mrf.mxu1 }
 0x1e6   : > { %v522_v8 = vmul.f32 0.01, %v500_v5 }
 0x1e7   : > { %v502_v7 = vpop.f32.mrf.mxu1 }
 0x1e8   : > { %v503_v9 = vadd.f32 %v502_v7, %v416_v3  ;;  %v528_v13 = vmax.f32 %v500_v5, %v522_v8 }
 0x1e9   : > { %v1109_v10 = vpop.f32.mrf.mxu1 }
 0x1ea   : > { %v523_v11 = vmul.f32 0.01, %v503_v9 }
 0x1eb   : > { %v507_v12 = vpop.f32.mrf.mxu1 }
 0x1ec   : > { %v529_v14 = vmax.f32 %v503_v9, %v523_v11  ;;  %v508_v15 = vadd.f32 %v507_v12, %v416_v3 }
 0x1ed   : > { %v1112_v16 = vpop.f32.mrf.mxu1 }
 0x1ee   : > { %v551_v17 = vpack.c.bf16 %v529_v14, %v528_v13  ;;  %v524_v19 = vmul.f32 0.01, %v508_v15  ;;  %v697_v14 = vsub.s32 3, %v1514_v20 }
 0x1ef   : > { %v510_v18 = vpop.f32.mrf.mxu1 }
 0x1f0   : > { %v511_v21 = vadd.f32 %v510_v18, %v416_v3  ;;  %1135 = vmatmul.mubr.bf16.vlgmr.msra.gmra.mxu0 %v551_v17  ;;  %v530_v26 = vmax.f32 %v508_v15, %v524_v19  ;;  %v698_v15 = vrot.slane %v1520_v22, %v697_v14 }
 0x1f1   : > { %v1113_v23 = vpop.f32.mrf.mxu1  ;;  %1138 = vmatprep.mubr.msk.bf16.mxu0 %vm1363_vm0, %v1362_v0  ;;  %1147 = vmatpush3.bf16.msra.mxu0 %v1260_v60 }
 0x1f2   : > { %v525_v24 = vmul.f32 0.01, %v511_v21  ;;  %1148 = vmatprep.subr.bf16.mxu0 %v1362_v0 }
 0x1f3   : > { %v515_v25 = vpop.f32.mrf.mxu1 }
 0x1f4   : > { %v531_v27 = vmax.f32 %v511_v21, %v525_v24  ;;  %v516_v28 = vadd.f32 %v515_v25, %v416_v3 }
 0x1f5   : > { %v1116_v29 = vpop.f32.mrf.mxu1  ;;  %1149 = vmatpush3.bf16.msra.mxu0 %v1261_v61 }
 0x1f6   : > { %v552_v30 = vpack.c.bf16 %v531_v27, %v530_v26  ;;  %1150 = vmatprep.subr.bf16.mxu0 %v1362_v0  ;;  %v526_v32 = vmul.f32 0.01, %v516_v28 }
 0x1f7   : > { %v518_v31 = vpop.f32.mrf.mxu1 }
 0x1f8   : > { %v519_v33 = vadd.f32 %v518_v31, %v416_v3  ;;  %1139 = vmatmul.mubr.bf16.gmra.mxu0 %v552_v30  ;;  %v532_v36 = vmax.f32 %v516_v28, %v526_v32 }
 0x1f9   : > { %v1117_v34 = vpop.f32.mrf.mxu1  ;;  %1142 = vmatprep.mubr.msk.bf16.mxu0 %vm1363_vm0, %v1362_v0  ;;  %1151 = vmatpush3.bf16.msra.mxu0 %v1262_v62 }
 0x1fa   : > { %v527_v35 = vmul.f32 0.01, %v519_v33  ;;  %1152 = vmatprep.subr.bf16.mxu0 %v1362_v0 }
 0x1fc   : > { %v533_v37 = vmax.f32 %v519_v33, %v527_v35 }
 0x1fd   : > { %1153 = vmatpush3.bf16.msra.mxu0 %v1263_v63 }
 0x1fe   : > { %v553_v38 = vpack.c.bf16 %v533_v37, %v532_v36  ;;  %1154 = vmatprep.subr.bf16.mxu0 %v1362_v0 }
 0x200   : > { %1143 = vmatmul.mubr.bf16.gmra.mxu0 %v553_v38 }
 0x201   : > { %1155 = vmatpush3.bf16.msra.mxu0 %v1264_v1  ;;  %1162 = vmatprep.mubr.msk.bf16.mxu0 %vm1363_vm0, %v1362_v0 }
 0x202   : > { %1156 = vmatprep.subr.bf16.mxu0 %v1362_v0 }
 0x205   : > { %1157 = vmatpush3.bf16.msra.mxu0 %v1265_v39 }
 0x206   : > { %1158 = vmatprep.subr.bf16.mxu0 %v1362_v0 }
 0x209   : > { %1159 = vmatpush3.bf16.msra.mxu0 %v1266_v40 }
 0x20a   : > { %1160 = vmatprep.subr.bf16.mxu0 %v1362_v0 }
 0x20d   : > { %1161 = vmatpush3.bf16.msra.mxu0 %v1267_v41 }
 0x2b0   : > { %v640_v44 = vpop.f32.mrf.mxu0 }
 0x2b1   : > { %v641_v45 = vadd.f32 %v640_v44, %v557_v43 }
 0x2b2   : > { %v1136_v46 = vpop.f32.mrf.mxu0 }
 0x2b3   : > { %v663_v48 = vmul.f32 0.01, %v641_v45 }
 0x2b4   : > { %v643_v47 = vpop.f32.mrf.mxu0 }
 0x2b5   : > { %v644_v49 = vadd.f32 %v643_v47, %v557_v43  ;;  %v669_v53 = vmax.f32 %v641_v45, %v663_v48 }
 0x2b6   : > { %v1137_v50 = vpop.f32.mrf.mxu0 }
 0x2b7   : > { %v664_v51 = vmul.f32 0.01, %v644_v49 }
 0x2b8   : > { %v648_v52 = vpop.f32.mrf.mxu0 }
 0x2b9   : > { %v670_v54 = vmax.f32 %v644_v49, %v664_v51  ;;  %v649_v55 = vadd.f32 %v648_v52, %v557_v43 }
 0x2ba   : > { %v1140_v56 = vpop.f32.mrf.mxu0 }
 0x2bb   : > { %v692_v57 = vpack.c.bf16 %v670_v54, %v669_v53  ;;  %v665_v59 = vmul.f32 0.01, %v649_v55 }
 0x2bc   : > { %v651_v58 = vpop.f32.mrf.mxu0 }
 0x2bd   : > { %v652_v60 = vadd.f32 %v651_v58, %v557_v43  ;;  %1163 = vmatmul.mubr.bf16.vlgmr.msra.gmra.mxu0 %v692_v57  ;;  %v671_v1 = vmax.f32 %v649_v55, %v665_v59 }
 0x2be   : > { %v1141_v61 = vpop.f32.mrf.mxu0 }
 0x2bf   : > { %v666_v62 = vmul.f32 0.01, %v652_v60 }
 0x2c0   : > { %v656_v63 = vpop.f32.mrf.mxu0 }
 0x2c1   : > { %v672_v2 = vmax.f32 %v652_v60, %v666_v62  ;;  %v657_v3 = vadd.f32 %v656_v63, %v557_v43 }
 0x2c2   : > { %v1144_v4 = vpop.f32.mrf.mxu0 }
 0x2c3   : > { %v693_v5 = vpack.c.bf16 %v672_v2, %v671_v1  ;;  %v667_v7 = vmul.f32 0.01, %v657_v3  ;;  %v867_v4 = vsub.s32 4, %v1514_v20 }
 0x2c4   : > { %v659_v6 = vpop.f32.mrf.mxu0 }
 0x2c5   : > { %v660_v8 = vadd.f32 %v659_v6, %v557_v43  ;;  %1167 = vmatmul.mubr.bf16.vlgmr.msra.gmra.mxu1 %v693_v5  ;;  %v673_v11 = vmax.f32 %v657_v3, %v667_v7 }
 0x2c6   : > { %v1145_v9 = vpop.f32.mrf.mxu0  ;;  %1170 = vmatprep.mubr.msk.bf16.mxu1 %vm1363_vm0, %v1362_v0 }
 0x2c7   : > { %v668_v10 = vmul.f32 0.01, %v660_v8  ;;  %v883_v9 = vsub.s32 5, %v1514_v20 }
 0x2c9   : > { %v674_v12 = vmax.f32 %v660_v8, %v668_v10  ;;  %v868_v8 = vrot.slane %v1520_v22, %v867_v4  ;;  %v884_v14 = vrot.slane %v1520_v22, %v883_v9 }
 0x2cb   : > { %v694_v13 = vpack.c.bf16 %v674_v12, %v673_v11 }
 0x2cd   : > { %1171 = vmatmul.mubr.bf16.gmra.mxu1 %v694_v13 }
 0x37d   : > { %v781_v16 = vpop.f32.mrf.mxu0 }
 0x37e   : > { %v782_v17 = vadd.f32 %v781_v16, %v698_v15 }
 0x37f   : > { %v1164_v18 = vpop.f32.mrf.mxu0 }
 0x380   : > { %804 = vadd.xlane.f32.xlu0 %v782_v17 }
 0x381   : > { %v784_v19 = vpop.f32.mrf.mxu0 }
 0x382   : > { %v785_v21 = vadd.f32 %v784_v19, %v698_v15 }
 0x383   : > { %v1165_v23 = vpop.f32.mrf.mxu0 }
 0x384   : > { %806 = vadd.xlane.f32.xlu0 %v785_v21 }
 0x385   : > { %v789_v24 = vpop.f32.mrf.mxu1 }
 0x386   : > { %v790_v25 = vadd.f32 %v789_v24, %v698_v15 }
 0x387   : > { %v1168_v0 = vpop.f32.mrf.mxu1 }
 0x388   : > { %808 = vadd.xlane.f32.xlu1 %v790_v25 }
 0x389   : > { %v792_v26 = vpop.f32.mrf.mxu1 }
 0x38a   : > { %v793_v27 = vadd.f32 %v792_v26, %v698_v15 }
 0x38b   : > { %v1169_v28 = vpop.f32.mrf.mxu1 }
 0x38c   : > { %810 = vadd.xlane.f32.xlu1 %v793_v27 }
 0x38d   : > { %v797_v29 = vpop.f32.mrf.mxu1 }
 0x38e   : > { %v798_v30 = vadd.f32 %v797_v29, %v698_v15 }
 0x38f   : > { %v1172_v31 = vpop.f32.mrf.mxu1 }
 0x390   : > { %812 = vadd.xlane.f32.xlu0 %v798_v30 }
 0x391   : > { %v800_v32 = vpop.f32.mrf.mxu1 }
 0x392   : > { %v801_v33 = vadd.f32 %v800_v32, %v698_v15 }
 0x393   : > { %v1173_v34 = vpop.f32.mrf.mxu1 }
 0x394   : > { %814 = vadd.xlane.f32.xlu1 %v801_v33 }
 0x409   : > { %v805_v35 = vpop.xlane.xlu0 %804 }
 0x40a   : > { %v817_v36 = vmul.f32 0.0078125, %v805_v35 }
 0x40c   : > { %v823_v37 = vsub.f32 %v782_v17, %v817_v36 }
 0x40d   : > { %v807_v38 = vpop.xlane.xlu0 %806 }
 0x40e   : > { %v818_v39 = vmul.f32 0.0078125, %v807_v38  ;;  %v829_v40 = vmul.f32 %v823_v37, %v823_v37 }
 0x410   : > { %v824_v41 = vsub.f32 %v785_v21, %v818_v39  ;;  %835 = vadd.xlane.f32.xlu0 %v829_v40 }
 0x411   : > { %v809_v42 = vpop.xlane.xlu1 %808 }
 0x412   : > { %v819_v43 = vmul.f32 0.0078125, %v809_v42  ;;  %v830_v44 = vmul.f32 %v824_v41, %v824_v41 }
 0x414   : > { %v825_v45 = vsub.f32 %v790_v25, %v819_v43  ;;  %837 = vadd.xlane.f32.xlu1 %v830_v44 }
 0x415   : > { %v811_v46 = vpop.xlane.xlu1 %810 }
 0x416   : > { %v820_v47 = vmul.f32 0.0078125, %v811_v46  ;;  %v831_v48 = vmul.f32 %v825_v45, %v825_v45 }
 0x418   : > { %v826_v49 = vsub.f32 %v793_v27, %v820_v47  ;;  %839 = vadd.xlane.f32.xlu0 %v831_v48 }
 0x419   : > { %v813_v50 = vpop.xlane.xlu0 %812 }
 0x41a   : > { %v821_v51 = vmul.f32 0.0078125, %v813_v50  ;;  %v832_v52 = vmul.f32 %v826_v49, %v826_v49 }
 0x41c   : > { %v827_v53 = vsub.f32 %v798_v30, %v821_v51  ;;  %841 = vadd.xlane.f32.xlu1 %v832_v52 }
 0x41d   : > { %v815_v54 = vpop.xlane.xlu1 %814 }
 0x41e   : > { %v822_v55 = vmul.f32 0.0078125, %v815_v54  ;;  %v833_v56 = vmul.f32 %v827_v53, %v827_v53 }
 0x420   : > { %v828_v57 = vsub.f32 %v801_v33, %v822_v55  ;;  %843 = vadd.xlane.f32.xlu0 %v833_v56 }
 0x422   : > { %v834_v58 = vmul.f32 %v828_v57, %v828_v57 }
 0x424   : > { %845 = vadd.xlane.f32.xlu1 %v834_v58 }
 0x499   : > { %v836_v59 = vpop.xlane.xlu0 %835 }
 0x49a   : > { %v847_v60 = vmul.f32 0.0078125, %v836_v59 }
 0x49c   : > { %v853_v61 = vadd.f32 1e-05, %v847_v60 }
 0x49d   : > { %v838_v62 = vpop.xlane.xlu1 %837 }
 0x49e   : > { %1268 = vrsqrt.f32 %v853_v61  ;;  %v848_v63 = vmul.f32 0.0078125, %v838_v62 }
 0x4a0   : > { %v854_v1 = vadd.f32 1e-05, %v848_v63 }
 0x4a1   : > { %v840_v2 = vpop.xlane.xlu0 %839 }
 0x4a2   : > { %1270 = vrsqrt.f32 %v854_v1  ;;  %v849_v3 = vmul.f32 0.0078125, %v840_v2 }
 0x4a4   : > { %v855_v5 = vadd.f32 1e-05, %v849_v3 }
 0x4a5   : > { %v842_v6 = vpop.xlane.xlu1 %841 }
 0x4a6   : > { %1272 = vrsqrt.f32 %v855_v5  ;;  %v850_v7 = vmul.f32 0.0078125, %v842_v6 }
 0x4a8   : > { %v856_v10 = vadd.f32 1e-05, %v850_v7 }
 0x4a9   : > { %v844_v11 = vpop.xlane.xlu0 %843 }
 0x4aa   : > { %1274 = vrsqrt.f32 %v856_v10  ;;  %v851_v12 = vmul.f32 0.0078125, %v844_v11 }
 0x4ab   : > { %v1269_v13 = vpop.eup %1268 }
 0x4ac   : > { %v869_v15 = vmul.f32 %v1269_v13, %v868_v8  ;;  %v857_v16 = vadd.f32 1e-05, %v851_v12 }
 0x4ad   : > { %v846_v17 = vpop.xlane.xlu1 %845 }
 0x4ae   : > { %v875_v18 = vmul.f32 %v869_v15, %v823_v37  ;;  %1276 = vrsqrt.f32 %v857_v16  ;;  %v852_v19 = vmul.f32 0.0078125, %v846_v17 }
 0x4af   : > { %v1271_v21 = vpop.eup %1270 }
 0x4b0   : > { %v885_v20 = vadd.f32 %v884_v14, %v875_v18  ;;  %v870_v23 = vmul.f32 %v1271_v21, %v868_v8  ;;  %v858_v24 = vadd.f32 1e-05, %v852_v19 }
 0x4b2   : > { %891 = vst [vmem:[%s281_s28] sm:$0xff] %v885_v20  ;;  %v876_v25 = vmul.f32 %v870_v23, %v824_v41  ;;  %1278 = vrsqrt.f32 %v858_v24 }
 0x4b3   : > { %v1273_v0 = vpop.eup %1272 }
 0x4b4   : > { %v886_v26 = vadd.f32 %v884_v14, %v876_v25  ;;  %v871_v22 = vmul.f32 %v1273_v0, %v868_v8 }
 0x4b6   : > { %892 = vst [vmem:[%s281_s28 + $0x8] sm:$0xff] %v886_v26  ;;  %v877_v27 = vmul.f32 %v871_v22, %v825_v45 }
 0x4b7   : > { %v1275_v28 = vpop.eup %1274 }
 0x4b8   : > { %v887_v29 = vadd.f32 %v884_v14, %v877_v27  ;;  %v872_v30 = vmul.f32 %v1275_v28, %v868_v8 }
 0x4ba   : > { %893 = vst [vmem:[%s281_s28 + $0x10] sm:$0xff] %v887_v29  ;;  %v878_v31 = vmul.f32 %v872_v30, %v826_v49 }
 0x4bb   : > { %v1277_v32 = vpop.eup %1276 }
 0x4bc   : > { %v888_v33 = vadd.f32 %v884_v14, %v878_v31  ;;  %v873_v34 = vmul.f32 %v1277_v32, %v868_v8 }
 0x4be   : > { %894 = vst [vmem:[%s281_s28 + $0x18] sm:$0xff] %v888_v33  ;;  %v879_v35 = vmul.f32 %v873_v34, %v827_v53 }
 0x4bf   : > { %v1279_v36 = vpop.eup %1278 }
 0x4c0   : > { %v889_v37 = vadd.f32 %v884_v14, %v879_v35  ;;  %v874_v38 = vmul.f32 %v1279_v36, %v868_v8 }
 0x4c2   : > { %895 = vst [vmem:[%s281_s28 + $0x20] sm:$0xff] %v889_v37  ;;  %v880_v39 = vmul.f32 %v874_v38, %v828_v57 }
 0x4c4   : > { %v890_v40 = vadd.f32 %v884_v14, %v880_v39 }
 0x4c6   : > { %896 = vst [vmem:[%s281_s28 + $0x28] sm:$0xff] %v890_v40 }
 0x4c7 PF: > { %p19_p1 = scmp.ge.s32.totalorder %s1415_s27, 4   ;;  %s1595_s23 = smov %s1348_s24 }
 0x4c8   : > { %s1596_s24 = smov %s1352_s25  ;;  %s1597_s25 = smov %s1437_s11 }
 0x4c9   : > { %s1598_s0 = smov %s1415_s27  ;;  %21 = sbr.rel (!%p19_p1) target bundleno = 17 (0x11), region = 80 }
 0x4ce   :  { %919 = vsyncpa [#allocation5], 1 }
 0x4cf   :  { %921 = vsyncpa [#allocation5 + $0x1], 1 }

// kernel: encoder_apply.1
= control target key start
LH: loop header
LB: loop body
LE: loop exit
PB: predicated region body
PF: predicated region fallthrough
CT: control target
= control target key end

     0   :  { %s1675_s0 = inlined_call_operand.vmem [shape: s32[2], index: 0, kind: input, shape index: {}]   ;;  %s1676_s1 = inlined_call_operand.vmem [shape: bf16[96,6], index: 1, kind: input, shape index: {}]   ;;  %s1677_s2 = inlined_call_operand.vmem [shape: bf16[2,6,128], index: 2, kind: input, shape index: {}]   ;;  %s1678_s3 = inlined_call_operand.hbm [shape: bf16[2,3,128,128], index: 3, kind: input, shape index: {}]   ;;  %s1679_s4 = inlined_call_operand.vmem [shape: f32[2,6,128], index: 4, kind: input, shape index: {}]   ;;  %s1680_s5 = inlined_call_operand.vmem [shape: f32[96,128], index: 5, kind: output, shape index: {}]  }
   0x1   :  { %s10_s20 = sshll.u32 %s1675_s0, 4  ;;  %s11_s20 = int_to_ptr.vmem [resolvable:$true] %s10_s20 }
   0x2   :  { %s1332_s21 = scalar_lea.vmem %s11_s20, 16  ;;  %p1337_p1 = scmp.lt.s32.totalorder %s11_s20, %s11_s20 }
   0x3   :  { %p1333_p0 = scmp.ne.s32.totalorder %s11_s20, %s1332_s21  ;;  %p1338_p2 = scmp.lt.s32.totalorder %s1332_s21, %s1332_s21 }
   0x5   :  { %p1339_p3 = por %p1338_p2, %p1337_p1 }
   0x7   :  { %p1340_p4 = pnand %p1339_p3, %p1333_p0 }
   0x9   :  { %1343 = shalt.err (!%p1340_p4)  }
   0xa   :  { %s1410_s22 = smov [#allocation3]  }
   0xb   :  { %13 = dma.vmem_to_smem %s11_s20, 16, %s1410_s22, [#allocation2] }
   0xc   :  { %1388 = dma.done.wait [#allocation2], 16 }
   0xd   :  { %1389 = vsyncadd [#allocation2], 4294967280 }
   0xe   :  { %15 = sfence }
   0xf   :  { %16 = vsyncpa [#allocation5], 0 }
  0x10   :  { %18 = vsyncpa [#allocation5 + $0x1], 0  ;;  %s1449_s23 = smov 0   ;;  %s1451_s24 = smov 0  }
  0x11   :  { %s1453_s0 = smov 0   ;;  %s1455_s25 = smov 0  }
  0x12 LB: > { %s1465_s26 = sadd.s32 1, %s1408_s25   ;;  %s1467_s27 = sadd.s32 4294967295, %s1408_s25   ;;  %s1408_s25 = sphi %s1455_s25, %s1691_s25   ;;  %s1404_s0 = sphi %s1453_s0, %s1690_s0   ;;  %s1400_s24 = sphi %s1451_s24, %s1689_s24   ;;  %s1396_s23 = sphi %s1449_s23, %s1688_s23  }
  0x13   : > { %s82_s28 = sld [smem:[#allocation3 + %s1408_s25]]  ;;  %p94_p5 = scmp.ne.s32.totalorder %s1404_s0, %s1400_s24 }
  0x14   : > { %s83_s29 = sld [smem:[#allocation3 + %s1465_s26]]  ;;  %p95_p6 = scmp.eq.s32.totalorder %s1408_s25, 0 }
  0x15   : > { %p100_p7 = scmp.ne.s32.totalorder %s1400_s24, %s1396_s23  ;;  %p101_p8 = scmp.eq.s32.totalorder %s1467_s27, 0 }
  0x16   : > { %p1474_p9 = por %p95_p6, %p94_p5  ;;  %p1255_p10 = scmp.lt.s32.totalorder %s1408_s25, 2 }
  0x17   : > { %p1478_p11 = por %p101_p8, %p100_p7  ;;  %s196_s7 = sand.u32 1, %s1404_s0  }
  0x18   : > { %s87_s8 = sadd.s32 1, %s1404_s0  ;;  %s1242_s9 = smul.u32 192, %s196_s7 }
  0x19   : > { %s1683_s6 = scalar_select %p1478_p11, 1, 0 }
  0x1a   : > { %s84_s10 = ssub.s32 %s82_s28, %s83_s29  ;;  %p1486_p12 = pnand %p1255_p10, %p1474_p9 }
  0x1b   : > { %p85_p13 = scmp.eq.s32.totalorder %s84_s10, 0  ;;  %s200_s16 = scalar_lea.vmem [#allocation4], %s1242_s9 }
  0x1c   : > { %s1245_s12 = scalar_select %p1474_p9, [#allocation3], [#allocation6] }
  0x1d   : > { %s1493_s13 = scalar_select %p85_p13, %s1404_s0, %s87_s8  }
  0x1e   : > { %s1246_s14 = scalar_select %p1474_p9, %s1408_s25, 0 }
  0x1f   : > { %s1693_s12 = smov (!%p1255_p10, %s1245_s12), [#allocation7]  ;;  %s208_s17 = sshll.u32 %s200_s16, 4  ;;  %s1501_s17 = int_to_ptr.vmem [resolvable:$true] %s208_s17 }
  0x20   : > { %s1695_s14 = smov (!%p1255_p10, %s1246_s14), 0  ;;  %p1022_p0 = scmp.ge.s32.totalorder %s1408_s25, 1 }
  0x21   : > { %s201_s15 = sld [smem:[%s1693_s12 + %s1695_s14]]  ;;  %p225_p1 = scmp.lt.s32.totalorder %s1408_s25, 3 }
  0x22   : > { %s1508_s23 = scalar_lea.sflag [#allocation5], %s196_s7  ;;  %p1346_p4 = pneg %p1486_p12 }
  0x23   : > { %p1497_p2 = pnand %p1022_p0, %p225_p1  ;;  %s1349_s30 = scalar_lea.hbm %s1678_s3, 6144 }
  0x25   : > { %s1685_s18 = scalar_select %p1497_p2, 1, 0 }
  0x27   : > { %s1243_s19 = smul.u32 3072, %s201_s15 }
  0x29   : > { %s1506_s22 = scalar_lea.hbm %s1678_s3, %s1243_s19 }
  0x2a   : > { %s1344_s28 = scalar_lea.hbm %s1506_s22, 3072  ;;  %p1350_p7 = scmp.lt.s32.totalorder %s1506_s22, %s1678_s3 }
  0x2b   : > { %p1345_p3 = scmp.ne.s32.totalorder %s1506_s22, %s1344_s28  ;;  %p1351_p8 = scmp.lt.s32.totalorder %s1349_s30, %s1344_s28 }
  0x2d   : > { %p1347_p5 = pnand %p1346_p4, %p1345_p3  ;;  %p1352_p9 = por %p1351_p8, %p1350_p7 }
  0x2f   : > { %p1348_p6 = pneg %p1347_p5 }
  0x31   : > { %p1353_p10 = pnand %p1352_p9, %p1348_p6 }
  0x33   : > { %1356 = shalt.err (!%p1353_p10)
}
  0x34   : > { %s1357_s7 = scalar_lea.vmem %s1501_s17, 3072  ;;  %s1411_s10 = smov [#allocation4]  }
  0x35   : > { %p1358_p13 = scmp.ne.s32.totalorder %s1501_s17, %s1357_s7  ;;  %s1362_s12 = sshll.u32 %s1411_s10, 4  ;;  %s1363_s12 = int_to_ptr.vmem [resolvable:$false] %s1362_s12 }
  0x36   : > { %s1364_s14 = scalar_lea.vmem %s1363_s12, 6144  ;;  %p1365_p3 = scmp.lt.s32.totalorder %s1501_s17, %s1363_s12 }
  0x37   : > { %p1360_p0 = pnand %p1358_p13, %p1346_p4  ;;  %p1366_p5 = scmp.lt.s32.totalorder %s1364_s14, %s1357_s7 }
  0x39   : > { %p1361_p1 = pneg %p1360_p0  ;;  %p1367_p11 = por %p1366_p5, %p1365_p3 }
  0x3b   : > { %p1368_p2 = pnand %p1367_p11, %p1361_p1 }
  0x3d   : > { %1371 = shalt.err (!%p1368_p2)
}
  0x3e   : > { %s1412_s15 = smov 64   ;;  %s1413_s16 = smov 4  }
  0x3f   : > { %1254 = dma.hbm_to_vmem [thread:$0]  (!%p1486_p12), %s1506_s22, 3072, %s1501_s17, %s1508_s23, %s1412_s15, %s1412_s15, %s1413_s16  }
  0x40   : > { %p1686_p4 = scmp.ne.s32.totalorder %s1685_s18, 0 }
  0x41   : > { %s231_s19 = sand.u32 (!%p1686_p4), 1, %s1400_s24   ;;  %p1687_p11 = scmp.ne.s32.totalorder (!%p1686_p4), %s1683_s6, 0 }
  0x42   : > { %229 = sbr.rel (%p1686_p4) target bundleno = 1225 (0x4c9), region = 36  ;;  %s232_s21 = scalar_lea.sflag (!%p1686_p4), [#allocation5], %s231_s19 }
  0x43   : > { %s1244_s20 = smul.u32 (!%p1686_p4), 192, %s231_s19 }
  0x45   : > { %s1532_s28 = scalar_lea.vmem (!%p1686_p4), [#allocation4], %s1244_s20 }
  0x47   : > { %1391 = dma.done.wait (%p1687_p11), %s232_s21, 3072  }
  0x48   : > { %1393 = vsyncadd (%p1687_p11), %s232_s21, 4294964224  ;;  %s275_s11 = smul.u32 6, %s1467_s27  ;;  %v1414_v0 = vmov 0.0   ;;  %s281_s17 = sld [smem:[#allocation3 + %s1467_s27]]  ;;  %vm1415_vm0 = vmmov 0   ;;  %v1296_v1 = vld [vmem:[%s1532_s28 + $0x38] sm:$0xff]   ;;  %v309_v19 = vlaneseq }
  0x49   : > { %1128 = vmatprep.subr.bf16.mxu0 %v1414_v0  ;;  %1130 = vmatprep.mubr.msk.bf16.mxu0 %vm1415_vm0, %v1414_v0  ;;  %vm338_vm1 = vcmask 1042432   ;;  %v1297_v2 = vld [vmem:[%s1532_s28 + $0x30] sm:$0xff]   ;;  %v1298_v3 = vld [vmem:[%s1532_s28 + $0x28] sm:$0xff]   ;;  %vm328_vm2 = vcmask 48128   ;;  %v1299_v7 = vld [vmem:[%s1532_s28 + $0x20] sm:$0xff]   ;;  %s288_s9 = sld [smem:[#allocation3 + %s1467_s27]] }
  0x4a   : > { %p276_p12 = scmp.lt.s32.totalorder %s275_s11, 11  ;;  %1142 = vmatprep.subr.bf16.mxu1 %v1414_v0  ;;  %1158 = vmatprep.mubr.msk.bf16.mxu1 %vm1415_vm0, %v1414_v0  ;;  %v1300_v8 = vld [vmem:[%s1532_s28 + $0x18] sm:$0xff]   ;;  %v1301_v11 = vld [vmem:[%s1532_s28 + $0x10] sm:$0xff]   ;;  %v1302_v12 = vld [vmem:[%s1532_s28 + $0x8] sm:$0xff]   ;;  %v1597_v20 = vshrl.u32 %v309_v19, 7 }
  0x4b   : > { %1143 = vmatpush3.bf16.msra.mxu1 %v1296_v1  ;;  %v1303_v13 = vld [vmem:[%s1532_s28] sm:$0xff]   ;;  %v1304_v14 = vld [vmem:[%s1532_s28 + $0x78] sm:$0xff]   ;;  %v1305_v15 = vld [vmem:[%s1532_s28 + $0x70] sm:$0xff]  }
  0x4c   : > { %s1697_s11 = smov (!%p276_p12, %s275_s11), 11  ;;  %1144 = vmatprep.subr.bf16.mxu1 %v1414_v0  ;;  %v1306_v16 = vld [vmem:[%s1532_s28 + $0x68] sm:$0xff]   ;;  %v1307_v17 = vld [vmem:[%s1532_s28 + $0x60] sm:$0xff]   ;;  %v1308_v18 = vld [vmem:[%s1532_s28 + $0x58] sm:$0xff]   ;;  %v311_v21 = vsub.s32 0, %v1597_v20 }
  0x4d   : > { %s1023_s6 = sshll.u32 %s1697_s11, 2  ;;  %v1309_v57 = vld [vmem:[%s1532_s28 + $0x50] sm:$0xff]   ;;  %v1310_v58 = vld [vmem:[%s1532_s28 + $0x48] sm:$0xff]   ;;  %v1311_v59 = vld [vmem:[%s1532_s28 + $0x40] sm:$0xff]   ;;  %s1026_s27 = sshll.u32 %s1697_s11, 3 }
  0x4e   : > { %p282_p2 = scmp.lt.s32.totalorder %s281_s17, 1  ;;  %s1552_s23 = scalar_lea.vmem %s1676_s1, %s1023_s6  ;;  %v1312_v60 = vld [vmem:[%s1532_s28 + $0xb8] sm:$0xff]   ;;  %v1313_v61 = vld [vmem:[%s1532_s28 + $0xb0] sm:$0xff]   ;;  %v1314_v62 = vld [vmem:[%s1532_s28 + $0xa8] sm:$0xff]  }
  0x4f   : > { %1145 = vmatpush3.bf16.msra.mxu1 %v1297_v2  ;;  %v1293_v6 = vld [vmem:[%s1552_s23] sm:$0xff]   ;;  %v1294_v9 = vld [vmem:[%s1552_s23 + $0x8] sm:$0xff]   ;;  %v1295_v10 = vld [vmem:[%s1552_s23 + $0x10] sm:$0xff]   ;;  %p289_p6 = scmp.lt.s32.totalorder %s288_s9, 1  ;;  %v432_v2 = vsub.s32 1, %v1597_v20  ;;  %s298_s19 = scalar_lea.vmem %s1680_s5, %s1026_s27 }
  0x50   : > { %s1699_s17 = smov (!%p282_p2, %s281_s17), 1  ;;  %1146 = vmatprep.subr.bf16.mxu1 %v1414_v0  ;;  %v1315_v63 = vld [vmem:[%s1532_s28 + $0xa0] sm:$0xff]   ;;  %v1316_v1 = vld [vmem:[%s1532_s28 + $0x98] sm:$0xff]  }
  0x51   : > { %s1024_s25 = sshll.u32 %s1699_s17, 2  ;;  %s1701_s9 = smov (!%p289_p6, %s288_s9), 1 }
  0x52   : > { %s285_s8 = scalar_lea.vmem %s1677_s2, %s1024_s25  ;;  %s1025_s7 = sshll.u32 %s1701_s9, 3 }
  0x53   : > { %v308_v4 = vld [vmem:[%s285_s8] sm:$0x7]  ;;  %1147 = vmatpush3.bf16.msra.mxu1 %v1298_v3  ;;  %s292_s14 = scalar_lea.vmem %s1679_s4, %s1025_s7 }
  0x54   : > { %v340_v5 = vsel %vm338_vm1, %v308_v4, 0  ;;  %1148 = vmatprep.subr.bf16.mxu1 %v1414_v0  ;;  %v1603_v22 = vld [vmem:[%s292_s14] sm:$0x3f] }
  0x55   : > { %1129 = vmatpush3.bf16.msra.mxu0 %v340_v5  ;;  %v312_v23 = vrot.slane %v1603_v22, %v311_v21  ;;  %v433_v3 = vrot.slane %v1603_v22, %v432_v2 }
  0x56   : > { %1170 = vmatprep.subr.bf16.mxu0 %v1414_v0 }
  0x57   : > { %1149 = vmatpush3.bf16.msra.mxu1 %v1299_v7 }
  0x58   : > { %1131 = vmatmul.mubr.msk.bf16.vlgmr.msra.gmra.mxu0 %vm328_vm2, %v1293_v6  ;;  %1150 = vmatprep.subr.bf16.mxu1 %v1414_v0 }
  0x59   : > { %1134 = vmatprep.mubr.msk.bf16.mxu0 %vm1415_vm0, %v1414_v0  ;;  %1171 = vmatpush3.bf16.msra.mxu0 %v1304_v14 }
  0x5a   : > { %1172 = vmatprep.subr.bf16.mxu0 %v1414_v0 }
  0x5b   : > { %1151 = vmatpush3.bf16.msra.mxu1 %v1300_v8 }
  0x5c   : > { %1152 = vmatprep.subr.bf16.mxu1 %v1414_v0 }
  0x5d   : > { %1173 = vmatpush3.bf16.msra.mxu0 %v1305_v15 }
  0x5e   : > { %1174 = vmatprep.subr.bf16.mxu0 %v1414_v0 }
  0x5f   : > { %1153 = vmatpush3.bf16.msra.mxu1 %v1301_v11 }
  0x60   : > { %1135 = vmatmul.mubr.msk.bf16.gmra.mxu0 %vm328_vm2, %v1294_v9  ;;  %1154 = vmatprep.subr.bf16.mxu1 %v1414_v0 }
  0x61   : > { %1138 = vmatprep.mubr.msk.bf16.mxu0 %vm1415_vm0, %v1414_v0  ;;  %1175 = vmatpush3.bf16.msra.mxu0 %v1306_v16 }
  0x62   : > { %1176 = vmatprep.subr.bf16.mxu0 %v1414_v0 }
  0x63   : > { %1155 = vmatpush3.bf16.msra.mxu1 %v1302_v12 }
  0x64   : > { %1156 = vmatprep.subr.bf16.mxu1 %v1414_v0 }
  0x65   : > { %1177 = vmatpush3.bf16.msra.mxu0 %v1307_v17 }
  0x66   : > { %1178 = vmatprep.subr.bf16.mxu0 %v1414_v0 }
  0x67   : > { %1157 = vmatpush3.bf16.msra.mxu1 %v1303_v13 }
  0x68   : > { %1139 = vmatmul.mubr.msk.bf16.gmra.mxu0 %vm328_vm2, %v1295_v10  ;;  %1226 = vmatprep.subr.bf16.mxu1 %v1414_v0 }
  0x69   : > { %1186 = vmatprep.mubr.msk.bf16.mxu0 %vm1415_vm0, %v1414_v0  ;;  %1179 = vmatpush3.bf16.msra.mxu0 %v1308_v18 }
  0x6a   : > { %1180 = vmatprep.subr.bf16.mxu0 %v1414_v0 }
  0x6d   : > { %1181 = vmatpush3.bf16.msra.mxu0 %v1309_v57 }
  0x6e   : > { %1182 = vmatprep.subr.bf16.mxu0 %v1414_v0 }
  0x71   : > { %1183 = vmatpush3.bf16.msra.mxu0 %v1310_v58 }
  0x72   : > { %1184 = vmatprep.subr.bf16.mxu0 %v1414_v0 }
  0x75   : > { %1185 = vmatpush3.bf16.msra.mxu0 %v1311_v59 }
  0x76   : > { %1198 = vmatprep.subr.bf16.mxu0 %v1414_v0 }
 0x118   : > { %v376_v24 = vpop.f32.mrf.mxu0 }
 0x119   : > { %v377_v25 = vadd.f32 %v376_v24, %v312_v23 }
 0x11a   : > { %v1132_v26 = vpop.f32.mrf.mxu0 }
 0x11b   : > { %v399_v28 = vmul.f32 0.01, %v377_v25 }
 0x11c   : > { %v379_v27 = vpop.f32.mrf.mxu0 }
 0x11d   : > { %v380_v29 = vadd.f32 %v379_v27, %v312_v23  ;;  %v405_v33 = vmax.f32 %v377_v25, %v399_v28 }
 0x11e   : > { %v1133_v30 = vpop.f32.mrf.mxu0 }
 0x11f   : > { %v400_v31 = vmul.f32 0.01, %v380_v29 }
 0x120   : > { %v384_v32 = vpop.f32.mrf.mxu0 }
 0x121   : > { %v406_v34 = vmax.f32 %v380_v29, %v400_v31  ;;  %v385_v35 = vadd.f32 %v384_v32, %v312_v23 }
 0x122   : > { %v1136_v36 = vpop.f32.mrf.mxu0 }
 0x123   : > { %v427_v37 = vpack.c.bf16 %v406_v34, %v405_v33  ;;  %v401_v39 = vmul.f32 0.01, %v385_v35 }
 0x124   : > { %v387_v38 = vpop.f32.mrf.mxu0 }
 0x125   : > { %v388_v40 = vadd.f32 %v387_v38, %v312_v23  ;;  %1159 = vmatmul.mubr.bf16.vlgmr.msra.gmra.mxu1 %v427_v37  ;;  %v407_v44 = vmax.f32 %v385_v35, %v401_v39  ;;  %v1317_v39 = vld [vmem:[%s1532_s28 + $0x90] sm:$0xff]  }
 0x126   : > { %v1137_v41 = vpop.f32.mrf.mxu0  ;;  %1162 = vmatprep.mubr.msk.bf16.mxu1 %vm1415_vm0, %v1414_v0  ;;  %1234 = vmatpush3.bf16.msra.mxu1 %v1312_v60 }
 0x127   : > { %v402_v42 = vmul.f32 0.01, %v388_v40  ;;  %1227 = vmatprep.subr.bf16.mxu1 %v1414_v0  ;;  %v1319_v41 = vld [vmem:[%s1532_s28 + $0x80] sm:$0xff]  }
 0x128   : > { %v392_v43 = vpop.f32.mrf.mxu0 }
 0x129   : > { %v408_v45 = vmax.f32 %v388_v40, %v402_v42  ;;  %v393_v46 = vadd.f32 %v392_v43, %v312_v23  ;;  %v1318_v40 = vld [vmem:[%s1532_s28 + $0x88] sm:$0xff]   ;;  %v573_v42 = vsub.s32 2, %v1597_v20 }
 0x12a   : > { %v1140_v47 = vpop.f32.mrf.mxu0  ;;  %1235 = vmatpush3.bf16.msra.mxu1 %v1313_v61 }
 0x12b   : > { %v428_v48 = vpack.c.bf16 %v408_v45, %v407_v44  ;;  %v403_v50 = vmul.f32 0.01, %v393_v46  ;;  %1228 = vmatprep.subr.bf16.mxu1 %v1414_v0  ;;  %v574_v43 = vrot.slane %v1603_v22, %v573_v42 }
 0x12c   : > { %v395_v49 = vpop.f32.mrf.mxu0 }
 0x12d   : > { %v396_v51 = vadd.f32 %v395_v49, %v312_v23  ;;  %1163 = vmatmul.mubr.bf16.gmra.mxu1 %v428_v48  ;;  %v409_v54 = vmax.f32 %v393_v46, %v403_v50 }
 0x12e   : > { %v1141_v52 = vpop.f32.mrf.mxu0  ;;  %1166 = vmatprep.mubr.msk.bf16.mxu1 %vm1415_vm0, %v1414_v0  ;;  %1236 = vmatpush3.bf16.msra.mxu1 %v1314_v62 }
 0x12f   : > { %v404_v53 = vmul.f32 0.01, %v396_v51  ;;  %1229 = vmatprep.subr.bf16.mxu1 %v1414_v0 }
 0x131   : > { %v410_v55 = vmax.f32 %v396_v51, %v404_v53 }
 0x132   : > { %1237 = vmatpush3.bf16.msra.mxu1 %v1315_v63 }
 0x133   : > { %v429_v56 = vpack.c.bf16 %v410_v55, %v409_v54  ;;  %1230 = vmatprep.subr.bf16.mxu1 %v1414_v0 }
 0x135   : > { %1167 = vmatmul.mubr.bf16.gmra.mxu1 %v429_v56 }
 0x136   : > { %1218 = vmatprep.mubr.msk.bf16.mxu1 %vm1415_vm0, %v1414_v0  ;;  %1238 = vmatpush3.bf16.msra.mxu1 %v1316_v1 }
 0x137   : > { %1231 = vmatprep.subr.bf16.mxu1 %v1414_v0 }
 0x13a   : > { %1239 = vmatpush3.bf16.msra.mxu1 %v1317_v39 }
 0x13b   : > { %1232 = vmatprep.subr.bf16.mxu1 %v1414_v0 }
 0x13e   : > { %1240 = vmatpush3.bf16.msra.mxu1 %v1318_v40 }
 0x13f   : > { %1233 = vmatprep.subr.bf16.mxu1 %v1414_v0 }
 0x142   : > { %1241 = vmatpush3.bf16.msra.mxu1 %v1319_v41 }
 0x1e5   : > { %v516_v4 = vpop.f32.mrf.mxu1 }
 0x1e6   : > { %v517_v5 = vadd.f32 %v516_v4, %v433_v3 }
 0x1e7   : > { %v1160_v6 = vpop.f32.mrf.mxu1 }
 0x1e8   : > { %v539_v8 = vmul.f32 0.01, %v517_v5 }
 0x1e9   : > { %v519_v7 = vpop.f32.mrf.mxu1 }
 0x1ea   : > { %v520_v9 = vadd.f32 %v519_v7, %v433_v3  ;;  %v545_v13 = vmax.f32 %v517_v5, %v539_v8 }
 0x1eb   : > { %v1161_v10 = vpop.f32.mrf.mxu1 }
 0x1ec   : > { %v540_v11 = vmul.f32 0.01, %v520_v9 }
 0x1ed   : > { %v524_v12 = vpop.f32.mrf.mxu1 }
 0x1ee   : > { %v546_v14 = vmax.f32 %v520_v9, %v540_v11  ;;  %v525_v15 = vadd.f32 %v524_v12, %v433_v3 }
 0x1ef   : > { %v1164_v16 = vpop.f32.mrf.mxu1 }
 0x1f0   : > { %v568_v17 = vpack.c.bf16 %v546_v14, %v545_v13  ;;  %v541_v19 = vmul.f32 0.01, %v525_v15  ;;  %v714_v14 = vsub.s32 3, %v1597_v20 }
 0x1f1   : > { %v527_v18 = vpop.f32.mrf.mxu1 }
 0x1f2   : > { %v528_v21 = vadd.f32 %v527_v18, %v433_v3  ;;  %1187 = vmatmul.mubr.bf16.vlgmr.msra.gmra.mxu0 %v568_v17  ;;  %v547_v26 = vmax.f32 %v525_v15, %v541_v19  ;;  %v715_v15 = vrot.slane %v1603_v22, %v714_v14 }
 0x1f3   : > { %v1165_v23 = vpop.f32.mrf.mxu1  ;;  %1190 = vmatprep.mubr.msk.bf16.mxu0 %vm1415_vm0, %v1414_v0  ;;  %1199 = vmatpush3.bf16.msra.mxu0 %v1312_v60 }
 0x1f4   : > { %v542_v24 = vmul.f32 0.01, %v528_v21  ;;  %1200 = vmatprep.subr.bf16.mxu0 %v1414_v0 }
 0x1f5   : > { %v532_v25 = vpop.f32.mrf.mxu1 }
 0x1f6   : > { %v548_v27 = vmax.f32 %v528_v21, %v542_v24  ;;  %v533_v28 = vadd.f32 %v532_v25, %v433_v3 }
 0x1f7   : > { %v1168_v29 = vpop.f32.mrf.mxu1  ;;  %1201 = vmatpush3.bf16.msra.mxu0 %v1313_v61 }
 0x1f8   : > { %v569_v30 = vpack.c.bf16 %v548_v27, %v547_v26  ;;  %1202 = vmatprep.subr.bf16.mxu0 %v1414_v0  ;;  %v543_v32 = vmul.f32 0.01, %v533_v28 }
 0x1f9   : > { %v535_v31 = vpop.f32.mrf.mxu1 }
 0x1fa   : > { %v536_v33 = vadd.f32 %v535_v31, %v433_v3  ;;  %1191 = vmatmul.mubr.bf16.gmra.mxu0 %v569_v30  ;;  %v549_v36 = vmax.f32 %v533_v28, %v543_v32 }
 0x1fb   : > { %v1169_v34 = vpop.f32.mrf.mxu1  ;;  %1194 = vmatprep.mubr.msk.bf16.mxu0 %vm1415_vm0, %v1414_v0  ;;  %1203 = vmatpush3.bf16.msra.mxu0 %v1314_v62 }
 0x1fc   : > { %v544_v35 = vmul.f32 0.01, %v536_v33  ;;  %1204 = vmatprep.subr.bf16.mxu0 %v1414_v0 }
 0x1fe   : > { %v550_v37 = vmax.f32 %v536_v33, %v544_v35 }
 0x1ff   : > { %1205 = vmatpush3.bf16.msra.mxu0 %v1315_v63 }
 0x200   : > { %v570_v38 = vpack.c.bf16 %v550_v37, %v549_v36  ;;  %1206 = vmatprep.subr.bf16.mxu0 %v1414_v0 }
 0x202   : > { %1195 = vmatmul.mubr.bf16.gmra.mxu0 %v570_v38 }
 0x203   : > { %1207 = vmatpush3.bf16.msra.mxu0 %v1316_v1  ;;  %1214 = vmatprep.mubr.msk.bf16.mxu0 %vm1415_vm0, %v1414_v0 }
 0x204   : > { %1208 = vmatprep.subr.bf16.mxu0 %v1414_v0 }
 0x207   : > { %1209 = vmatpush3.bf16.msra.mxu0 %v1317_v39 }
 0x208   : > { %1210 = vmatprep.subr.bf16.mxu0 %v1414_v0 }
 0x20b   : > { %1211 = vmatpush3.bf16.msra.mxu0 %v1318_v40 }
 0x20c   : > { %1212 = vmatprep.subr.bf16.mxu0 %v1414_v0 }
 0x20f   : > { %1213 = vmatpush3.bf16.msra.mxu0 %v1319_v41 }
 0x2b2   : > { %v657_v44 = vpop.f32.mrf.mxu0 }
 0x2b3   : > { %v658_v45 = vadd.f32 %v657_v44, %v574_v43 }
 0x2b4   : > { %v1188_v46 = vpop.f32.mrf.mxu0 }
 0x2b5   : > { %v680_v48 = vmul.f32 0.01, %v658_v45 }
 0x2b6   : > { %v660_v47 = vpop.f32.mrf.mxu0 }
 0x2b7   : > { %v661_v49 = vadd.f32 %v660_v47, %v574_v43  ;;  %v686_v53 = vmax.f32 %v658_v45, %v680_v48 }
 0x2b8   : > { %v1189_v50 = vpop.f32.mrf.mxu0 }
 0x2b9   : > { %v681_v51 = vmul.f32 0.01, %v661_v49 }
 0x2ba   : > { %v665_v52 = vpop.f32.mrf.mxu0 }
 0x2bb   : > { %v687_v54 = vmax.f32 %v661_v49, %v681_v51  ;;  %v666_v55 = vadd.f32 %v665_v52, %v574_v43 }
 0x2bc   : > { %v1192_v56 = vpop.f32.mrf.mxu0 }
 0x2bd   : > { %v709_v57 = vpack.c.bf16 %v687_v54, %v686_v53  ;;  %v682_v59 = vmul.f32 0.01, %v666_v55 }
 0x2be   : > { %v668_v58 = vpop.f32.mrf.mxu0 }
 0x2bf   : > { %v669_v60 = vadd.f32 %v668_v58, %v574_v43  ;;  %1215 = vmatmul.mubr.bf16.vlgmr.msra.gmra.mxu0 %v709_v57  ;;  %v688_v1 = vmax.f32 %v666_v55, %v682_v59 }
 0x2c0   : > { %v1193_v61 = vpop.f32.mrf.mxu0 }
 0x2c1   : > { %v683_v62 = vmul.f32 0.01, %v669_v60 }
 0x2c2   : > { %v673_v63 = vpop.f32.mrf.mxu0 }
 0x2c3   : > { %v689_v2 = vmax.f32 %v669_v60, %v683_v62  ;;  %v674_v3 = vadd.f32 %v673_v63, %v574_v43 }
 0x2c4   : > { %v1196_v4 = vpop.f32.mrf.mxu0 }
 0x2c5   : > { %v710_v5 = vpack.c.bf16 %v689_v2, %v688_v1  ;;  %v684_v7 = vmul.f32 0.01, %v674_v3  ;;  %v884_v4 = vsub.s32 4, %v1597_v20 }
 0x2c6   : > { %v676_v6 = vpop.f32.mrf.mxu0 }
 0x2c7   : > { %v677_v8 = vadd.f32 %v676_v6, %v574_v43  ;;  %1219 = vmatmul.mubr.bf16.vlgmr.msra.gmra.mxu1 %v710_v5  ;;  %v690_v11 = vmax.f32 %v674_v3, %v684_v7 }
 0x2c8   : > { %v1197_v9 = vpop.f32.mrf.mxu0  ;;  %1222 = vmatprep.mubr.msk.bf16.mxu1 %vm1415_vm0, %v1414_v0 }
 0x2c9   : > { %v685_v10 = vmul.f32 0.01, %v677_v8  ;;  %v900_v9 = vsub.s32 5, %v1597_v20 }
 0x2cb   : > { %v691_v12 = vmax.f32 %v677_v8, %v685_v10  ;;  %v885_v8 = vrot.slane %v1603_v22, %v884_v4  ;;  %v901_v14 = vrot.slane %v1603_v22, %v900_v9 }
 0x2cd   : > { %v711_v13 = vpack.c.bf16 %v691_v12, %v690_v11 }
 0x2cf   : > { %1223 = vmatmul.mubr.bf16.gmra.mxu1 %v711_v13 }
 0x37f   : > { %v798_v16 = vpop.f32.mrf.mxu0 }
 0x380   : > { %v799_v17 = vadd.f32 %v798_v16, %v715_v15 }
 0x381   : > { %v1216_v18 = vpop.f32.mrf.mxu0 }
 0x382   : > { %821 = vadd.xlane.f32.xlu0 %v799_v17 }
 0x383   : > { %v801_v19 = vpop.f32.mrf.mxu0 }
 0x384   : > { %v802_v21 = vadd.f32 %v801_v19, %v715_v15 }
 0x385   : > { %v1217_v23 = vpop.f32.mrf.mxu0 }
 0x386   : > { %823 = vadd.xlane.f32.xlu0 %v802_v21 }
 0x387   : > { %v806_v24 = vpop.f32.mrf.mxu1 }
 0x388   : > { %v807_v25 = vadd.f32 %v806_v24, %v715_v15 }
 0x389   : > { %v1220_v0 = vpop.f32.mrf.mxu1 }
 0x38a   : > { %825 = vadd.xlane.f32.xlu1 %v807_v25 }
 0x38b   : > { %v809_v26 = vpop.f32.mrf.mxu1 }
 0x38c   : > { %v810_v27 = vadd.f32 %v809_v26, %v715_v15 }
 0x38d   : > { %v1221_v28 = vpop.f32.mrf.mxu1 }
 0x38e   : > { %827 = vadd.xlane.f32.xlu1 %v810_v27 }
 0x38f   : > { %v814_v29 = vpop.f32.mrf.mxu1 }
 0x390   : > { %v815_v30 = vadd.f32 %v814_v29, %v715_v15 }
 0x391   : > { %v1224_v31 = vpop.f32.mrf.mxu1 }
 0x392   : > { %829 = vadd.xlane.f32.xlu0 %v815_v30 }
 0x393   : > { %v817_v32 = vpop.f32.mrf.mxu1 }
 0x394   : > { %v818_v33 = vadd.f32 %v817_v32, %v715_v15 }
 0x395   : > { %v1225_v34 = vpop.f32.mrf.mxu1 }
 0x396   : > { %831 = vadd.xlane.f32.xlu1 %v818_v33 }
 0x40b   : > { %v822_v35 = vpop.xlane.xlu0 %821 }
 0x40c   : > { %v834_v36 = vmul.f32 0.0078125, %v822_v35 }
 0x40e   : > { %v840_v37 = vsub.f32 %v799_v17, %v834_v36 }
 0x40f   : > { %v824_v38 = vpop.xlane.xlu0 %823 }
 0x410   : > { %v835_v39 = vmul.f32 0.0078125, %v824_v38  ;;  %v846_v40 = vmul.f32 %v840_v37, %v840_v37 }
 0x412   : > { %v841_v41 = vsub.f32 %v802_v21, %v835_v39  ;;  %852 = vadd.xlane.f32.xlu0 %v846_v40 }
 0x413   : > { %v826_v42 = vpop.xlane.xlu1 %825 }
 0x414   : > { %v836_v43 = vmul.f32 0.0078125, %v826_v42  ;;  %v847_v44 = vmul.f32 %v841_v41, %v841_v41 }
 0x416   : > { %v842_v45 = vsub.f32 %v807_v25, %v836_v43  ;;  %854 = vadd.xlane.f32.xlu1 %v847_v44 }
 0x417   : > { %v828_v46 = vpop.xlane.xlu1 %827 }
 0x418   : > { %v837_v47 = vmul.f32 0.0078125, %v828_v46  ;;  %v848_v48 = vmul.f32 %v842_v45, %v842_v45 }
 0x41a   : > { %v843_v49 = vsub.f32 %v810_v27, %v837_v47  ;;  %856 = vadd.xlane.f32.xlu0 %v848_v48 }
 0x41b   : > { %v830_v50 = vpop.xlane.xlu0 %829 }
 0x41c   : > { %v838_v51 = vmul.f32 0.0078125, %v830_v50  ;;  %v849_v52 = vmul.f32 %v843_v49, %v843_v49 }
 0x41e   : > { %v844_v53 = vsub.f32 %v815_v30, %v838_v51  ;;  %858 = vadd.xlane.f32.xlu1 %v849_v52 }
 0x41f   : > { %v832_v54 = vpop.xlane.xlu1 %831 }
 0x420   : > { %v839_v55 = vmul.f32 0.0078125, %v832_v54  ;;  %v850_v56 = vmul.f32 %v844_v53, %v844_v53 }
 0x422   : > { %v845_v57 = vsub.f32 %v818_v33, %v839_v55  ;;  %860 = vadd.xlane.f32.xlu0 %v850_v56 }
 0x424   : > { %v851_v58 = vmul.f32 %v845_v57, %v845_v57 }
 0x426   : > { %862 = vadd.xlane.f32.xlu1 %v851_v58 }
 0x49b   : > { %v853_v59 = vpop.xlane.xlu0 %852 }
 0x49c   : > { %v864_v60 = vmul.f32 0.0078125, %v853_v59 }
 0x49e   : > { %v870_v61 = vadd.f32 1e-05, %v864_v60 }
 0x49f   : > { %v855_v62 = vpop.xlane.xlu1 %854 }
 0x4a0   : > { %1320 = vrsqrt.f32 %v870_v61  ;;  %v865_v63 = vmul.f32 0.0078125, %v855_v62 }
 0x4a2   : > { %v871_v1 = vadd.f32 1e-05, %v865_v63 }
 0x4a3   : > { %v857_v2 = vpop.xlane.xlu0 %856 }
 0x4a4   : > { %1322 = vrsqrt.f32 %v871_v1  ;;  %v866_v3 = vmul.f32 0.0078125, %v857_v2 }
 0x4a6   : > { %v872_v5 = vadd.f32 1e-05, %v866_v3 }
 0x4a7   : > { %v859_v6 = vpop.xlane.xlu1 %858 }
 0x4a8   : > { %1324 = vrsqrt.f32 %v872_v5  ;;  %v867_v7 = vmul.f32 0.0078125, %v859_v6 }
 0x4aa   : > { %v873_v10 = vadd.f32 1e-05, %v867_v7 }
 0x4ab   : > { %v861_v11 = vpop.xlane.xlu0 %860 }
 0x4ac   : > { %1326 = vrsqrt.f32 %v873_v10  ;;  %v868_v12 = vmul.f32 0.0078125, %v861_v11 }
 0x4ad   : > { %v1321_v13 = vpop.eup %1320 }
 0x4ae   : > { %v886_v15 = vmul.f32 %v1321_v13, %v885_v8  ;;  %v874_v16 = vadd.f32 1e-05, %v868_v12 }
 0x4af   : > { %v863_v17 = vpop.xlane.xlu1 %862 }
 0x4b0   : > { %v892_v18 = vmul.f32 %v886_v15, %v840_v37  ;;  %1328 = vrsqrt.f32 %v874_v16  ;;  %v869_v19 = vmul.f32 0.0078125, %v863_v17 }
 0x4b1   : > { %v1323_v21 = vpop.eup %1322 }
 0x4b2   : > { %v902_v20 = vadd.f32 %v901_v14, %v892_v18  ;;  %v887_v23 = vmul.f32 %v1323_v21, %v885_v8  ;;  %v875_v24 = vadd.f32 1e-05, %v869_v19 }
 0x4b4   : > { %908 = vst [vmem:[%s298_s19] sm:$0xff] %v902_v20  ;;  %v893_v25 = vmul.f32 %v887_v23, %v841_v41  ;;  %1330 = vrsqrt.f32 %v875_v24 }
 0x4b5   : > { %v1325_v0 = vpop.eup %1324 }
 0x4b6   : > { %v903_v26 = vadd.f32 %v901_v14, %v893_v25  ;;  %v888_v22 = vmul.f32 %v1325_v0, %v885_v8 }
 0x4b8   : > { %909 = vst [vmem:[%s298_s19 + $0x8] sm:$0xff] %v903_v26  ;;  %v894_v27 = vmul.f32 %v888_v22, %v842_v45 }
 0x4b9   : > { %v1327_v28 = vpop.eup %1326 }
 0x4ba   : > { %v904_v29 = vadd.f32 %v901_v14, %v894_v27  ;;  %v889_v30 = vmul.f32 %v1327_v28, %v885_v8 }
 0x4bc   : > { %910 = vst [vmem:[%s298_s19 + $0x10] sm:$0xff] %v904_v29  ;;  %v895_v31 = vmul.f32 %v889_v30, %v843_v49 }
 0x4bd   : > { %v1329_v32 = vpop.eup %1328 }
 0x4be   : > { %v905_v33 = vadd.f32 %v901_v14, %v895_v31  ;;  %v890_v34 = vmul.f32 %v1329_v32, %v885_v8 }
 0x4c0   : > { %911 = vst [vmem:[%s298_s19 + $0x18] sm:$0xff] %v905_v33  ;;  %v896_v35 = vmul.f32 %v890_v34, %v844_v53 }
 0x4c1   : > { %v1331_v36 = vpop.eup %1330 }
 0x4c2   : > { %v906_v37 = vadd.f32 %v901_v14, %v896_v35  ;;  %v891_v38 = vmul.f32 %v1331_v36, %v885_v8 }
 0x4c4   : > { %912 = vst [vmem:[%s298_s19 + $0x20] sm:$0xff] %v906_v37  ;;  %v897_v39 = vmul.f32 %v891_v38, %v845_v57 }
 0x4c6   : > { %v907_v40 = vadd.f32 %v901_v14, %v897_v39 }
 0x4c8   : > { %913 = vst [vmem:[%s298_s19 + $0x28] sm:$0xff] %v907_v40 }
 0x4c9 PF: > { %p21_p7 = scmp.ge.s32.totalorder %s1465_s26, 4   ;;  %s1688_s23 = smov %s1400_s24 }
 0x4ca   : > { %s1689_s24 = smov %s1404_s0  ;;  %s1690_s0 = smov %s1493_s13 }
 0x4cb   : > { %s1691_s25 = smov %s1465_s26  ;;  %23 = sbr.rel (!%p21_p7) target bundleno = 18 (0x12), region = 87 }
 0x4d0   :  { %936 = vsyncpa [#allocation5], 1 }
 0x4d1   :  { %938 = vsyncpa [#allocation5 + $0x1], 1 }

</bundles_post_ra>
